<compile_context>
chip_gen: v5e
topology: v5e:2x2
jax: 0.10.0
libtpu: 0.0.40
codegen_flags: <defaults>
</compile_context>

<pallas_src>
import jax
import jax.numpy as jnp
from jax import lax
from jax.experimental import pallas as pl
from jax.experimental.pallas import tpu as pltpu

COORD_PAD = 8        # augmented contraction dim: [-2x,-2y,-2z, pp, 1, 0,0,0]
LANE = 128
BIG = 1e30           # "infinitely far" sentinel for padded rows / columns


def _round_up(x, m):
    return ((x + m - 1) // m) * m


def chamfer_loss_sqrt_t(points, gts, *, tn=None, tm=None,
                        mxu_precision=jax.lax.Precision.HIGHEST):
    """Returns (loss, p2g, g2p) — three scalars, matching ChamferLossSqrtT.forward."""
    B, N, C = points.shape
    Bg, M, Cg = gts.shape
    assert B == Bg and C == 3 and Cg == 3

    # Tile sizes: tn multiple of 8 (sublanes), tm multiple of 128 (lanes).
    if tn is None:
        tn = min(256, _round_up(N, 8))
    tn = max(8, _round_up(tn, 8))
    if tm is None:
        tm = min(512, _round_up(M, LANE))
    tm = max(LANE, _round_up(tm, LANE))
    groups = tm // LANE

    # Split the N axis in two when B == 1 so both v7x TensorCores get a
    # "parallel" grid slice; harmless (serial) on single-core chips.
    split = 2 if (B == 1 and _round_up(N, tn) >= 2 * tn) else 1

    n_pad = _round_up(N, tn * split)
    m_pad = _round_up(M, tm)
    n_half = n_pad // (tn * split)          # N tiles per split slice
    m_chunks = m_pad // tm
    mask_rows = (n_pad != N)

    f32 = jnp.float32

    # ---- O(N + M) operand prep in plain XLA (the O(N*M) kernel dominates) ----
    # lhs[i]  = [-2x, -2y, -2z, pp_i, 1, 0, 0, 0]   (pp_i = BIG for padded rows)
    # gT[:,j] = [gx, gy, gz, 1, gg_j, 0, 0, 0]^T    (gg_j = BIG for padded cols)
    # => dot(lhs, gT)[i, j] = pp_i - 2 p_i.g_j + gg_j = d2 (or ~BIG if masked).
    x = jnp.pad(points.astype(f32), ((0, 0), (0, n_pad - N), (0, 0)))
    pp = jnp.sum(x * x, axis=-1, keepdims=True)
    pp = jnp.where((jnp.arange(n_pad) < N)[None, :, None], pp, BIG)
    lhs = jnp.concatenate(
        [-2.0 * x, pp, jnp.ones((B, n_pad, 1), f32),
         jnp.zeros((B, n_pad, COORD_PAD - 5), f32)], axis=-1)       # (B, n_pad, 8)

    g = jnp.pad(gts.astype(f32), ((0, 0), (0, m_pad - M), (0, 0)))
    gg = jnp.sum(g * g, axis=-1, keepdims=True)
    gg = jnp.where((jnp.arange(m_pad) < M)[None, :, None], gg, BIG)
    rhs = jnp.concatenate(
        [g, jnp.ones((B, m_pad, 1), f32), gg,
         jnp.zeros((B, m_pad, COORD_PAD - 5), f32)], axis=-1)
    gT = jnp.transpose(rhs, (0, 2, 1))                              # (B, 8, m_pad)

    def kernel(p_ref, gT_ref, p2g_ref, g2p_ref):
        n_idx = pl.program_id(2)

        @pl.when(n_idx == 0)
        def _init():
            p2g_ref[...] = jnp.zeros_like(p2g_ref)
            g2p_ref[...] = jnp.full_like(g2p_ref, BIG)

        lhs_t = p_ref[0]                    # (tn, 8) fused operand

        def chunk_body(c, row_min):
            base = c * tm
            for grp in range(groups):       # static unroll: `groups` visible dots
                off = pl.multiple_of(base + grp * LANE, LANE)
                gblk = gT_ref[0, :, pl.ds(off, LANE)]               # (8, 128)
                d2 = jnp.dot(lhs_t, gblk,
                             preferred_element_type=jnp.float32,
                             precision=mxu_precision)               # (tn, 128)
                # points -> gts: defer the lane reduce; elementwise VPU min only.
                row_min = jnp.minimum(row_min, d2)
                # gts -> points: sublane min, combined into the resident output.
                col_min = jnp.min(d2, axis=0, keepdims=True)        # (1, 128)
                cur = g2p_ref[0, :, pl.ds(off, LANE)]
                g2p_ref[0, :, pl.ds(off, LANE)] = jnp.minimum(cur, col_min)
            return row_min

        row_min0 = jnp.full((tn, LANE), BIG, dtype=jnp.float32)
        row_min = lax.fori_loop(0, m_chunks, chunk_body, row_min0,
                                unroll=(True if m_chunks <= 8 else 2))

        # One XLU lane reduce per tile (deferred out of the hot loop), then
        # clamp (monotone, so safe after the min) and sqrt.
        row_d = jnp.sqrt(jnp.maximum(
            jnp.min(row_min, axis=1, keepdims=True), 0.0))          # (tn, 1)
        if mask_rows:
            row0 = (pl.program_id(1) * n_half + n_idx) * tn
            row_idx = row0 + lax.broadcasted_iota(jnp.int32, (tn, 1), 0)
            row_d = jnp.where(row_idx < N, row_d, 0.0)
        # (tn,1)->scalar reduce is once per tile and sub-noise; per-lane
        # partial-sum accumulation was evaluated and not worth extra state.
        p2g_ref[...] = p2g_ref[...] + jnp.sum(row_d)

    # Resident VMEM blocks (double-buffered by the pipeline) drive the limit.
    block_bytes = 4 * (2 * tn * COORD_PAD + 2 * COORD_PAD * m_pad
                       + 2 * LANE + 2 * m_pad)
    vmem_limit = int(min(max(32 * 1024 * 1024, block_bytes + (4 << 20)),
                         128 * 1024 * 1024))

    p2g_o, g2p_o = pl.pallas_call(
        kernel,
        out_shape=(jax.ShapeDtypeStruct((B * split, 1, LANE), f32),
                   jax.ShapeDtypeStruct((B * split, 1, m_pad), f32)),
        grid=(B, split, n_half),
        in_specs=[
            pl.BlockSpec((1, tn, COORD_PAD),
                         lambda b, s, n: (b, s * n_half + n, 0)),
            pl.BlockSpec((1, COORD_PAD, m_pad), lambda b, s, n: (b, 0, 0)),
        ],
        out_specs=(
            pl.BlockSpec((1, 1, LANE), lambda b, s, n: (b * split + s, 0, 0)),
            pl.BlockSpec((1, 1, m_pad), lambda b, s, n: (b * split + s, 0, 0)),
        ),
        compiler_params=pltpu.CompilerParams(
            dimension_semantics=("parallel", "parallel", "arbitrary"),
            vmem_limit_bytes=vmem_limit),
    )(lhs, gT)

    # Cheap O(B*M) epilogue in plain XLA.
    p2g = jnp.sum(p2g_o[:, 0, 0].reshape(B, split), axis=1) / N
    g2p_min = jnp.min(g2p_o.reshape(B, split, m_pad), axis=1)[:, :M]
    g2p = jnp.mean(jnp.sqrt(jnp.maximum(g2p_min, 0.0)), axis=1)
    loss = p2g + g2p
    # forward(): mean over the batch of each term
    return jnp.mean(loss), jnp.mean(p2g), jnp.mean(g2p)


def _reference(points, gts):
    d2 = jnp.sum((points[:, :, None, :] - gts[:, None, :, :]) ** 2, axis=-1)
    p2g = jnp.mean(jnp.sqrt(jnp.min(d2, axis=2)), axis=1)
    g2p = jnp.mean(jnp.sqrt(jnp.min(d2, axis=1)), axis=1)
    return jnp.mean(p2g + g2p), jnp.mean(p2g), jnp.mean(g2p)


if __name__ == "__main__":
    key = jax.random.PRNGKey(0)
    k1, k2, k3, k4 = jax.random.split(key, 4)

    # Case 1: B=2, non-multiple N/M, small tiles -> multi N-tile accumulators,
    # multi-chunk / multi-group inner loop, padding masks.
    B, N, M = 2, 200, 330
    points = jax.random.normal(k1, (B, N, 3), dtype=jnp.float32)
    gts = jax.random.normal(k2, (B, M, 3), dtype=jnp.float32)
    out = jax.block_until_ready(chamfer_loss_sqrt_t(points, gts, tn=64, tm=256))
    ref = _reference(points, gts)
    for a, b in zip(out, ref):
        assert jnp.allclose(a, b, atol=2e-3), (a, b)

    # Case 2: default (large-tile) path at the same shapes.
    out2 = jax.block_until_ready(chamfer_loss_sqrt_t(points, gts))
    for a, b in zip(out2, ref):
        assert jnp.allclose(a, b, atol=2e-3), (a, b)

    # Case 3: B=1 exercises the 2-way N split (dual-TensorCore path on v7x).
    N1, M1 = 300, 257
    p1 = jax.random.normal(k3, (1, N1, 3), dtype=jnp.float32)
    g1 = jax.random.normal(k4, (1, M1, 3), dtype=jnp.float32)
    out3 = jax.block_until_ready(chamfer_loss_sqrt_t(p1, g1, tn=128, tm=128))
    ref3 = _reference(p1, g1)
    for a, b in zip(out3, ref3):
        assert jnp.allclose(a, b, atol=2e-3), (a, b)

    print("KERNEL_OK")
</pallas_src>

<mosaic_0001>
module attributes {stable_mosaic.version = 11 : i64} {
  func.func @kernel(%arg0: i32, %arg1: i32, %arg2: i32, %arg3: memref<1x64x8xf32, #tpu.memory_space<vmem>>, %arg4: memref<1x8x512xf32, #tpu.memory_space<vmem>>, %arg5: memref<1x1x128xf32, #tpu.memory_space<vmem>>, %arg6: memref<1x1x512xf32, #tpu.memory_space<vmem>>) attributes {dimension_semantics = [#tpu.dimension_semantics<parallel>, #tpu.dimension_semantics<parallel>, #tpu.dimension_semantics<arbitrary>], iteration_bounds = array<i64: 2, 1, 4>, scalar_prefetch = 0 : i64, scratch_operands = 0 : i64, tpu.core_type = #tpu.core_type<tc>, window_params = [{transform_indices = @transform_0, window_bounds = array<i64: 1, 64, 8>}, {transform_indices = @transform_1, window_bounds = array<i64: 1, 8, 512>}, {transform_indices = @transform_2, window_bounds = array<i64: 1, 1, 128>}, {transform_indices = @transform_3, window_bounds = array<i64: 1, 1, 512>}]} {
    %c0_i32 = arith.constant 0 : i32
    %0 = arith.cmpi eq, %arg2, %c0_i32 : i32
    %1 = arith.extui %0 : i1 to i32
    %c0_i32_0 = arith.constant 0 : i32
    %2 = arith.cmpi ne, %1, %c0_i32_0 : i32
    scf.if %2 {
      %cst_50 = arith.constant 0.000000e+00 : f32
      %99 = vector.broadcast %cst_50 : f32 to vector<1x1x128xf32>
      %c0_51 = arith.constant 0 : index
      %c0_52 = arith.constant 0 : index
      %c0_53 = arith.constant 0 : index
      %100 = vector.load %arg5[%c0_51, %c0_52, %c0_53] : memref<1x1x128xf32, #tpu.memory_space<vmem>>, vector<1x1x128xf32>
      tpu.vector_store %arg5[%c0_51, %c0_52, %c0_53], %99 {strides = array<i32>} : memref<1x1x128xf32, #tpu.memory_space<vmem>>, vector<1x1x128xf32>,
      %cst_54 = arith.constant 1.000000e+30 : f32
      %101 = vector.broadcast %cst_54 : f32 to vector<1x1x512xf32>
      %c0_55 = arith.constant 0 : index
      %c0_56 = arith.constant 0 : index
      %c0_57 = arith.constant 0 : index
      %102 = vector.load %arg6[%c0_55, %c0_56, %c0_57] : memref<1x1x512xf32, #tpu.memory_space<vmem>>, vector<1x1x512xf32>
      tpu.vector_store %arg6[%c0_55, %c0_56, %c0_57], %101 {strides = array<i32>} : memref<1x1x512xf32, #tpu.memory_space<vmem>>, vector<1x1x512xf32>,
    } else {
    }
    %c0 = arith.constant 0 : index
    %c0_1 = arith.constant 0 : index
    %c0_2 = arith.constant 0 : index
    %3 = vector.load %arg3[%c0, %c0_1, %c0_2] : memref<1x64x8xf32, #tpu.memory_space<vmem>>, vector<1x64x8xf32>
    %4 = vector.shape_cast %3 : vector<1x64x8xf32> to vector<64x8xf32>
    %cst = arith.constant 1.000000e+30 : f32
    %5 = vector.broadcast %cst : f32 to vector<64x128xf32>
    %c0_i32_3 = arith.constant 0 : i32
    %c256_i32 = arith.constant 256 : i32
    %6 = arith.muli %c0_i32_3, %c256_i32 : i32
    %c0_i32_4 = arith.constant 0 : i32
    %7 = arith.addi %6, %c0_i32_4 : i32
    %8 = tpu.assume_multiple %7, 128 : i32
    %c0_5 = arith.constant 0 : index
    %c0_6 = arith.constant 0 : index
    %9 = arith.index_cast %8 : i32 to index
    %10 = vector.load %arg4[%c0_5, %c0_6, %9] : memref<1x8x512xf32, #tpu.memory_space<vmem>>, vector<1x8x128xf32>
    %11 = vector.shape_cast %10 : vector<1x8x128xf32> to vector<8x128xf32>
    %cst_7 = arith.constant dense<0.000000e+00> : vector<64x128xf32>
    %12 = tpu.matmul %4, %11, %cst_7 {dimension_numbers = #tpu.dot_dimension_numbers<[1], [0], [0], [1], [0, 0, 1, 1], [], []>, precision = #tpu.contract_precision<fp32>} : vector<64x8xf32>, vector<8x128xf32>, vector<64x128xf32> -> vector<64x128xf32>
    %13 = arith.minimumf %5, %12 : vector<64x128xf32>
    %cst_8 = arith.constant dense<0x7F800000> : vector<128xf32>
    %14 = vector.multi_reduction <minimumf>, %12, %cst_8 [0] : vector<64x128xf32> to vector<128xf32>
    %15 = vector.shape_cast %14 : vector<128xf32> to vector<1x128xf32>
    %c0_9 = arith.constant 0 : index
    %c0_10 = arith.constant 0 : index
    %16 = arith.index_cast %8 : i32 to index
    %17 = vector.load %arg6[%c0_9, %c0_10, %16] : memref<1x1x512xf32, #tpu.memory_space<vmem>>, vector<1x1x128xf32>
    %18 = vector.shape_cast %17 : vector<1x1x128xf32> to vector<1x128xf32>
    %19 = arith.minimumf %18, %15 : vector<1x128xf32>
    %c0_11 = arith.constant 0 : index
    %c0_12 = arith.constant 0 : index
    %20 = arith.index_cast %8 : i32 to index
    %21 = vector.load %arg6[%c0_11, %c0_12, %20] : memref<1x1x512xf32, #tpu.memory_space<vmem>>, vector<1x1x128xf32>
    %22 = vector.shape_cast %21 : vector<1x1x128xf32> to vector<1x128xf32>
    %23 = vector.shape_cast %19 : vector<1x128xf32> to vector<1x1x128xf32>
    tpu.vector_store %arg6[%c0_11, %c0_12, %20], %23 {strides = array<i32>} : memref<1x1x512xf32, #tpu.memory_space<vmem>>, vector<1x1x128xf32>,
    %c128_i32 = arith.constant 128 : i32
    %24 = arith.addi %6, %c128_i32 : i32
    %25 = tpu.assume_multiple %24, 128 : i32
    %c0_13 = arith.constant 0 : index
    %c0_14 = arith.constant 0 : index
    %26 = arith.index_cast %25 : i32 to index
    %27 = vector.load %arg4[%c0_13, %c0_14, %26] : memref<1x8x512xf32, #tpu.memory_space<vmem>>, vector<1x8x128xf32>
    %28 = vector.shape_cast %27 : vector<1x8x128xf32> to vector<8x128xf32>
    %cst_15 = arith.constant dense<0.000000e+00> : vector<64x128xf32>
    %29 = tpu.matmul %4, %28, %cst_15 {dimension_numbers = #tpu.dot_dimension_numbers<[1], [0], [0], [1], [0, 0, 1, 1], [], []>, precision = #tpu.contract_precision<fp32>} : vector<64x8xf32>, vector<8x128xf32>, vector<64x128xf32> -> vector<64x128xf32>
    %30 = arith.minimumf %13, %29 : vector<64x128xf32>
    %cst_16 = arith.constant dense<0x7F800000> : vector<128xf32>
    %31 = vector.multi_reduction <minimumf>, %29, %cst_16 [0] : vector<64x128xf32> to vector<128xf32>
    %32 = vector.shape_cast %31 : vector<128xf32> to vector<1x128xf32>
    %c0_17 = arith.constant 0 : index
    %c0_18 = arith.constant 0 : index
    %33 = arith.index_cast %25 : i32 to index
    %34 = vector.load %arg6[%c0_17, %c0_18, %33] : memref<1x1x512xf32, #tpu.memory_space<vmem>>, vector<1x1x128xf32>
    %35 = vector.shape_cast %34 : vector<1x1x128xf32> to vector<1x128xf32>
    %36 = arith.minimumf %35, %32 : vector<1x128xf32>
    %c0_19 = arith.constant 0 : index
    %c0_20 = arith.constant 0 : index
    %37 = arith.index_cast %25 : i32 to index
    %38 = vector.load %arg6[%c0_19, %c0_20, %37] : memref<1x1x512xf32, #tpu.memory_space<vmem>>, vector<1x1x128xf32>
    %39 = vector.shape_cast %38 : vector<1x1x128xf32> to vector<1x128xf32>
    %40 = vector.shape_cast %36 : vector<1x128xf32> to vector<1x1x128xf32>
    tpu.vector_store %arg6[%c0_19, %c0_20, %37], %40 {strides = array<i32>} : memref<1x1x512xf32, #tpu.memory_space<vmem>>, vector<1x1x128xf32>,
    %c1_i32 = arith.constant 1 : i32
    %c256_i32_21 = arith.constant 256 : i32
    %41 = arith.muli %c1_i32, %c256_i32_21 : i32
    %c0_i32_22 = arith.constant 0 : i32
    %42 = arith.addi %41, %c0_i32_22 : i32
    %43 = tpu.assume_multiple %42, 128 : i32
    %c0_23 = arith.constant 0 : index
    %c0_24 = arith.constant 0 : index
    %44 = arith.index_cast %43 : i32 to index
    %45 = vector.load %arg4[%c0_23, %c0_24, %44] : memref<1x8x512xf32, #tpu.memory_space<vmem>>, vector<1x8x128xf32>
    %46 = vector.shape_cast %45 : vector<1x8x128xf32> to vector<8x128xf32>
    %cst_25 = arith.constant dense<0.000000e+00> : vector<64x128xf32>
    %47 = tpu.matmul %4, %46, %cst_25 {dimension_numbers = #tpu.dot_dimension_numbers<[1], [0], [0], [1], [0, 0, 1, 1], [], []>, precision = #tpu.contract_precision<fp32>} : vector<64x8xf32>, vector<8x128xf32>, vector<64x128xf32> -> vector<64x128xf32>
    %48 = arith.minimumf %30, %47 : vector<64x128xf32>
    %cst_26 = arith.constant dense<0x7F800000> : vector<128xf32>
    %49 = vector.multi_reduction <minimumf>, %47, %cst_26 [0] : vector<64x128xf32> to vector<128xf32>
    %50 = vector.shape_cast %49 : vector<128xf32> to vector<1x128xf32>
    %c0_27 = arith.constant 0 : index
    %c0_28 = arith.constant 0 : index
    %51 = arith.index_cast %43 : i32 to index
    %52 = vector.load %arg6[%c0_27, %c0_28, %51] : memref<1x1x512xf32, #tpu.memory_space<vmem>>, vector<1x1x128xf32>
    %53 = vector.shape_cast %52 : vector<1x1x128xf32> to vector<1x128xf32>
    %54 = arith.minimumf %53, %50 : vector<1x128xf32>
    %c0_29 = arith.constant 0 : index
    %c0_30 = arith.constant 0 : index
    %55 = arith.index_cast %43 : i32 to index
    %56 = vector.load %arg6[%c0_29, %c0_30, %55] : memref<1x1x512xf32, #tpu.memory_space<vmem>>, vector<1x1x128xf32>
    %57 = vector.shape_cast %56 : vector<1x1x128xf32> to vector<1x128xf32>
    %58 = vector.shape_cast %54 : vector<1x128xf32> to vector<1x1x128xf32>
    tpu.vector_store %arg6[%c0_29, %c0_30, %55], %58 {strides = array<i32>} : memref<1x1x512xf32, #tpu.memory_space<vmem>>, vector<1x1x128xf32>,
    %c128_i32_31 = arith.constant 128 : i32
    %59 = arith.addi %41, %c128_i32_31 : i32
    %60 = tpu.assume_multiple %59, 128 : i32
    %c0_32 = arith.constant 0 : index
    %c0_33 = arith.constant 0 : index
    %61 = arith.index_cast %60 : i32 to index
    %62 = vector.load %arg4[%c0_32, %c0_33, %61] : memref<1x8x512xf32, #tpu.memory_space<vmem>>, vector<1x8x128xf32>
    %63 = vector.shape_cast %62 : vector<1x8x128xf32> to vector<8x128xf32>
    %cst_34 = arith.constant dense<0.000000e+00> : vector<64x128xf32>
    %64 = tpu.matmul %4, %63, %cst_34 {dimension_numbers = #tpu.dot_dimension_numbers<[1], [0], [0], [1], [0, 0, 1, 1], [], []>, precision = #tpu.contract_precision<fp32>} : vector<64x8xf32>, vector<8x128xf32>, vector<64x128xf32> -> vector<64x128xf32>
    %65 = arith.minimumf %48, %64 : vector<64x128xf32>
    %cst_35 = arith.constant dense<0x7F800000> : vector<128xf32>
    %66 = vector.multi_reduction <minimumf>, %64, %cst_35 [0] : vector<64x128xf32> to vector<128xf32>
    %67 = vector.shape_cast %66 : vector<128xf32> to vector<1x128xf32>
    %c0_36 = arith.constant 0 : index
    %c0_37 = arith.constant 0 : index
    %68 = arith.index_cast %60 : i32 to index
    %69 = vector.load %arg6[%c0_36, %c0_37, %68] : memref<1x1x512xf32, #tpu.memory_space<vmem>>, vector<1x1x128xf32>
    %70 = vector.shape_cast %69 : vector<1x1x128xf32> to vector<1x128xf32>
    %71 = arith.minimumf %70, %67 : vector<1x128xf32>
    %c0_38 = arith.constant 0 : index
    %c0_39 = arith.constant 0 : index
    %72 = arith.index_cast %60 : i32 to index
    %73 = vector.load %arg6[%c0_38, %c0_39, %72] : memref<1x1x512xf32, #tpu.memory_space<vmem>>, vector<1x1x128xf32>
    %74 = vector.shape_cast %73 : vector<1x1x128xf32> to vector<1x128xf32>
    %75 = vector.shape_cast %71 : vector<1x128xf32> to vector<1x1x128xf32>
    tpu.vector_store %arg6[%c0_38, %c0_39, %72], %75 {strides = array<i32>} : memref<1x1x512xf32, #tpu.memory_space<vmem>>, vector<1x1x128xf32>,
    %c2_i32 = arith.constant 2 : i32
    %cst_40 = arith.constant dense<0x7F800000> : vector<64xf32>
    %76 = vector.multi_reduction <minimumf>, %65, %cst_40 [1] : vector<64x128xf32> to vector<64xf32>
    %77 = vector.shape_cast %76 : vector<64xf32> to vector<64x1xf32>
    %cst_41 = arith.constant 0.000000e+00 : f32
    %78 = vector.broadcast %cst_41 : f32 to vector<64x1xf32>
    %79 = arith.maximumf %77, %78 : vector<64x1xf32>
    %80 = math.sqrt %79 : vector<64x1xf32>
    %c4_i32 = arith.constant 4 : i32
    %81 = arith.muli %arg1, %c4_i32 : i32
    %82 = arith.addi %81, %arg2 : i32
    %c64_i32 = arith.constant 64 : i32
    %83 = arith.muli %82, %c64_i32 : i32
    %84 = tpu.iota {dimensions = array<i32: 0>} : vector<64x1xi32>
    %85 = vector.broadcast %83 : i32 to vector<64x1xi32>
    %86 = arith.addi %85, %84 : vector<64x1xi32>
    %c200_i32 = arith.constant 200 : i32
    %87 = vector.broadcast %c200_i32 : i32 to vector<64x1xi32>
    %88 = arith.cmpi slt, %86, %87 : vector<64x1xi32>
    %cst_42 = arith.constant 0.000000e+00 : f32
    %89 = vector.broadcast %cst_42 : f32 to vector<64x1xf32>
    %90 = arith.select %88, %80, %89 : vector<64x1xi1>, vector<64x1xf32>
    %c0_43 = arith.constant 0 : index
    %c0_44 = arith.constant 0 : index
    %c0_45 = arith.constant 0 : index
    %91 = vector.load %arg5[%c0_43, %c0_44, %c0_45] : memref<1x1x128xf32, #tpu.memory_space<vmem>>, vector<1x1x128xf32>
    %92 = vector.shape_cast %90 : vector<64x1xf32> to vector<1x64x1xf32>
    %cst_46 = arith.constant dense<0.000000e+00> : vector<1xf32>
    %93 = vector.multi_reduction <add>, %92, %cst_46 [1, 2] : vector<1x64x1xf32> to vector<1xf32>
    %94 = vector.shape_cast %93 : vector<1xf32> to vector<1x1x1xf32>
    %95 = vector.extract %94[0, 0, 0] : f32 from vector<1x1x1xf32>
    %96 = vector.broadcast %95 : f32 to vector<1x1x128xf32>
    %97 = arith.addf %91, %96 : vector<1x1x128xf32>
    %c0_47 = arith.constant 0 : index
    %c0_48 = arith.constant 0 : index
    %c0_49 = arith.constant 0 : index
    %98 = vector.load %arg5[%c0_47, %c0_48, %c0_49] : memref<1x1x128xf32, #tpu.memory_space<vmem>>, vector<1x1x128xf32>
    tpu.vector_store %arg5[%c0_47, %c0_48, %c0_49], %97 {strides = array<i32>} : memref<1x1x128xf32, #tpu.memory_space<vmem>>, vector<1x1x128xf32>,
    return
  }
  func.func @transform_0(%arg0: i32, %arg1: i32, %arg2: i32) -> (i32, i32, i32) {
    %c4_i32 = arith.constant 4 : i32
    %0 = arith.muli %arg1, %c4_i32 : i32
    %1 = arith.addi %0, %arg2 : i32
    %c0_i32 = arith.constant 0 : i32
    %c0_i32_0 = arith.constant 0 : i32
    return %arg0, %1, %c0_i32 : i32, i32, i32
  }
  func.func @transform_1(%arg0: i32, %arg1: i32, %arg2: i32) -> (i32, i32, i32) {
    %c0_i32 = arith.constant 0 : i32
    %c0_i32_0 = arith.constant 0 : i32
    %c0_i32_1 = arith.constant 0 : i32
    return %arg0, %c0_i32, %c0_i32_0 : i32, i32, i32
  }
  func.func @transform_2(%arg0: i32, %arg1: i32, %arg2: i32) -> (i32, i32, i32) {
    %c1_i32 = arith.constant 1 : i32
    %0 = arith.muli %arg0, %c1_i32 : i32
    %1 = arith.addi %0, %arg1 : i32
    %c0_i32 = arith.constant 0 : i32
    %c0_i32_0 = arith.constant 0 : i32
    %c0_i32_1 = arith.constant 0 : i32
    return %1, %c0_i32, %c0_i32_0 : i32, i32, i32
  }
  func.func @transform_3(%arg0: i32, %arg1: i32, %arg2: i32) -> (i32, i32, i32) {
    %c1_i32 = arith.constant 1 : i32
    %0 = arith.muli %arg0, %c1_i32 : i32
    %1 = arith.addi %0, %arg1 : i32
    %c0_i32 = arith.constant 0 : i32
    %c0_i32_0 = arith.constant 0 : i32
    %c0_i32_1 = arith.constant 0 : i32
    return %1, %c0_i32, %c0_i32_0 : i32, i32, i32
  }
}

</mosaic_0001>

<bundles_post_ra>
// kernel: tpu_custom_call.1
= control target key start
LH: loop header
LB: loop body
LE: loop exit
PB: predicated region body
PF: predicated region fallthrough
CT: control target
= control target key end

     0   :  { %s3317_s0 = inlined_call_operand.vmem [shape: f32[2,256,8], index: 0, kind: input, shape index: {}]   ;;  %s3318_s1 = inlined_call_operand.vmem [shape: f32[2,8,512], index: 1, kind: input, shape index: {}]   ;;  %s3319_s2 = inlined_call_operand.hbm [shape: f32[2,1,128], index: 2, kind: output, shape index: {0}]   ;;  %s3320_s3 = inlined_call_operand.hbm [shape: f32[2,1,512], index: 3, kind: output, shape index: {1}]  }
   0x1   :  { %3324 = sst [smem:[#allocation11_spill]] %s3317_s0 }
   0x2   :  { %9 = vsyncpa [#allocation3], 0 }
   0x3   :  { %11 = vsyncpa [#allocation3 + $0x1], 0 }
   0x4   :  { %12 = vsyncpa [#allocation5], 0 }
   0x5   :  { %14 = vsyncpa [#allocation5 + $0x1], 0  ;;  %s2474_s12 = smov 0   ;;  %s2476_s13 = smov 0  }
   0x6   :  { %s2478_s14 = smov 0   ;;  %s2480_s15 = smov 0  }
   0x7   :  { %s2482_s16 = smov 0   ;;  %s2484_s17 = smov 0  }
   0x8   :  { %s2486_s18 = smov 0   ;;  %s2488_s19 = smov 0  }
   0x9 LB: > { %s2201_s20 = sadd.s32 4294967295, %s2450_s19   ;;  %s2202_s21 = sadd.s32 4294967294, %s2450_s19   ;;  %s2450_s19 = sphi %s2488_s19, %s20_s19   ;;  %s2446_s18 = sphi %s2486_s18, %s3342_s18   ;;  %s2442_s17 = sphi %s2484_s17, %s3341_s17   ;;  %s2438_s16 = sphi %s2482_s16, %s3340_s16   ;;  %s2434_s15 = sphi %s2480_s15, %s3339_s15   ;;  %s2430_s14 = sphi %s2478_s14, %s3338_s14   ;;  %s2426_s13 = sphi %s2476_s13, %s3337_s13   ;;  %s2422_s12 = sphi %s2474_s12, %s3336_s12  }
   0xa   : > { %s32_s22 = sadd.s32 1, %s2442_s17  ;;  %s39_s23 = sadd.s32 1, %s2446_s18 }
   0xb   : > { %p33_p0 = scmp.ge.s32.totalorder %s32_s22, 4  ;;  %p116_p1 = scmp.ne.s32.totalorder %s2430_s14, %s2426_s13 }
   0xc   : > { %p117_p2 = scmp.eq.s32.totalorder %s2201_s20, 7  ;;  %p122_p4 = scmp.ne.s32.totalorder %s2426_s13, %s2422_s12 }
   0xd   : > { %s3344_s22 = smov (%p33_p0, %s32_s22), 0  ;;  %s3346_s23 = smov (!%p33_p0, %s39_s23), %s2446_s18 }
   0xe   : > { %p2523_p3 = por %p117_p2, %p116_p1  ;;  %p41_p5 = scmp.ge.s32.totalorder %s3346_s23, 2 }
   0xf   : > { %p123_p6 = scmp.eq.s32.totalorder %s2202_s21, 7  ;;  %p2205_p7 = scmp.ge.s32.totalorder %s2450_s19, 1 }
  0x10   : > { %p194_p8 = scmp.lt.s32.totalorder %s2450_s19, 9  ;;  %s3348_s23 = smov (%p41_p5, %s3346_s23), 0 }
  0x11   : > { %3326 = sst [smem:[#allocation8_spill]] %s3348_s23  ;;  %p2533_p9 = por %p123_p6, %p122_p4 }
  0x12   : > { %p195_p10 = pnand %p2205_p7, %p194_p8  ;;  %s103_s26 = ssub.s32 %s2446_s18, %s3348_s23 }
  0x13   : > { %s106_s27 = sadd.s32 1, %s2430_s14  ;;  %p104_p11 = scmp.eq.s32.totalorder %s103_s26, 0 }
  0x14   : > { %198 = sbr.rel (%p195_p10) target bundleno = 895 (0x37f), region = 28 }
  0x15   : > { %s2541_s28 = scalar_select %p104_p11, %s2430_s14, %s106_s27  }
  0x19   : > { %s2544_s29 = sand.u32 1, %s2426_s13   ;;  %s2207_s30 = sshll.u32 %s2434_s15, 3 }
  0x1a   : > { %s2206_s4 = sshll.u32 %s2544_s29, 2  ;;  %p236_p12 = scmp.lt.s32.totalorder %s2438_s16, 1 }
  0x1b   : > { %p238_p13 = scmp.lt.s32.totalorder %s2207_s30, 31  ;;  %s3328_s0 = sld [smem:[#allocation11_spill]] }
  0x1c   : > { %s237_s5 = scalar_select %p236_p12, %s2438_s16, 1 }
  0x1d   : > { %s3350_s30 = smov (!%p238_p13, %s2207_s30), 31  ;;  %s2561_s27 = scalar_lea.vmem [#allocation2], %s2544_s29 }
  0x1e   : > { %s2208_s6 = sshll.u32 %s237_s5, 5  ;;  %s2563_s23 = scalar_lea.vmem [#allocation4], %s2206_s4 }
  0x1f   : > { %s241_s7 = sadd.s32 %s2208_s6, %s3350_s30  ;;  %s2553_s10 = scalar_lea.vmem %s3318_s1, %s2208_s6 }
  0x20   : > { %s2209_s11 = sshll.u32 %s241_s7, 3  ;;  %p2212_p0 = scmp.ne.s32.totalorder %s2434_s15, 0 }
  0x21   : > { %s2558_s26 = scalar_lea.vmem %s3328_s0, %s2209_s11 }
  0x22   : > { %257 = sbr.rel (%p2212_p0) target bundleno = 43 (0x2b), region = 32 }
  0x27   : > { %v259_v0 = vlaneseq  ;;  %v2452_v1 = vmov 0.0   ;;  %v2453_v2 = vmov 1e+30  }
  0x28   : > { %258 = vst [vmem:[%s2561_s27] sm:$0x1] %v2452_v1 }
  0x29   : > { %vm261_vm0 = vcmp.lt.s32.totalorder %v259_v0, 512 }
  0x2a   : > { %263 = vst.msk [vmem:[%s2563_s23] sm:$0xf] %vm261_vm0, %v2453_v2 }
  0x2b PF: > { %v272_v3 = vld [vmem:[%s2553_s10] sm:$0xff]  ;;  %vm273_vm1 = vcmask 64512   ;;  %v2213_v5 = vld [vmem:[%s2553_s10 + $0x8] sm:$0xff]  ;;  %v266_v12 = vld [vmem:[%s2558_s26 + $0x10] sm:$0xff]  ;;  %s2222_s30 = sshll.u32 %s2434_s15, 6  ;;  %vm2017_vm5 = vcmask 7168  }
  0x2c   : > { %v264_v4 = vld [vmem:[%s2558_s26] sm:$0xff]  ;;  %v313_v6 = vand.u32 4294901760, %v272_v3  ;;  %v706_v8 = vand.u32 4294901760, %v2213_v5  ;;  %v265_v9 = vld [vmem:[%s2558_s26 + $0x8] sm:$0xff]  ;;  %v281_v20 = vsel %vm273_vm1, %v266_v12, 0  ;;  %v267_v30 = vld [vmem:[%s2558_s26 + $0x18] sm:$0xff] }
  0x2d   : > { %v275_v7 = vsel %vm273_vm1, %v264_v4, 0  ;;  %v278_v11 = vsel %vm273_vm1, %v265_v9, 0  ;;  %v2596_v26 = vand.u32 4294901760, %v281_v20  ;;  %v284_v33 = vsel %vm273_vm1, %v267_v30, 0  ;;  %v268_v37 = vld [vmem:[%s2558_s26 + $0x20] sm:$0xff]  ;;  %v269_v44 = vld [vmem:[%s2558_s26 + $0x28] sm:$0xff] }
  0x2e   : > { %v2573_v10 = vand.u32 4294901760, %v275_v7  ;;  %v396_v13 = vsub.f32 %v272_v3, %v313_v6  ;;  %509 = vmatpush.msra.mxu3 %v313_v6  ;;  %314 = vmatpush.msra.mxu0 %v313_v6  ;;  %v789_v14 = vsub.f32 %v2213_v5, %v706_v8  ;;  %v2577_v15 = vand.u32 4294901760, %v278_v11  ;;  %v270_v51 = vld [vmem:[%s2558_s26 + $0x30] sm:$0xff]  ;;  %v271_v58 = vld [vmem:[%s2558_s26 + $0x38] sm:$0xff]  ;;  %s2224_s15 = sshll.u32 %s2438_s16, 2  ;;  %s2077_s7 = sshll.u32 %s2563_s23, 4  ;;  %s2078_s7 = int_to_ptr.vmem [resolvable:$true] %s2077_s7 }
  0x2f   : > { %v2606_v32 = vsub.f32 %v281_v20, %v2596_v26  ;;  %v2616_v36 = vand.u32 4294901760, %v284_v33  ;;  %v287_v40 = vsel %vm273_vm1, %v268_v37, 0  ;;  %v290_v47 = vsel %vm273_vm1, %v269_v44, 0  ;;  %s2075_s6 = scalar_lea.hbm %s3320_s3, %s2224_s15  ;;  %s2050_s9 = scalar_lea.sflag [#allocation5], %s2544_s29 }
  0x30   : > { %v2580_v16 = vsub.f32 %v275_v7, %v2573_v10  ;;  %451 = vmatpush.msra.mxu2 %v396_v13  ;;  %v397_v17 = vand.u32 4294901760, %v396_v13  ;;  %v790_v18 = vand.u32 4294901760, %v789_v14  ;;  %v2583_v19 = vsub.f32 %v278_v11, %v2577_v15  ;;  %v2216_v7 = vld [vmem:[%s2553_s10 + $0x10] sm:$0xff]  ;;  %s2079_s8 = sshll.u32 %s2075_s6, 4  ;;  %s2344_s26 = scalar_lea.hbm %s3320_s3, 8  ;;  %s2080_s8 = int_to_ptr.hbm [resolvable:$true] %s2079_s8 }
  0x31   : > { %v2614_v35 = vand.u32 4294901760, %v2606_v32  ;;  %v2624_v39 = vsub.f32 %v284_v33, %v2616_v36  ;;  %v2634_v43 = vand.u32 4294901760, %v287_v40  ;;  %v2652_v50 = vand.u32 4294901760, %v290_v47 }
  0x32   : > { %454 = vmatmul.f32.vlgmr.msra.gmra.mxu2 %v2580_v16  ;;  %v2588_v21 = vand.u32 4294901760, %v2580_v16  ;;  %v398_v22 = vsub.f32 %v396_v13, %v397_v17  ;;  %577 = vmatpush.msrb.mxu0 %v397_v17  ;;  %v791_v23 = vsub.f32 %v789_v14, %v790_v18  ;;  %v2594_v25 = vand.u32 4294901760, %v2583_v19 }
  0x33   : > { %707 = vmatpush.msrb.mxu2 %v706_v8  ;;  %v334_v38 = vsub.f32 %v2606_v32, %v2614_v35  ;;  %v2632_v42 = vand.u32 4294901760, %v2624_v39  ;;  %v2642_v46 = vsub.f32 %v287_v40, %v2634_v43  ;;  %v2660_v53 = vsub.f32 %v290_v47, %v2652_v50 }
  0x34   : > { %513 = vmatmul.f32.vlgmr.msra.gmra.mxu3 %v2588_v21  ;;  %v318_v24 = vsub.f32 %v2580_v16, %v2588_v21  ;;  %v399_v27 = vand.u32 4294901760, %v398_v22  ;;  %v792_v28 = vand.u32 4294901760, %v791_v23  ;;  %v326_v31 = vsub.f32 %v2583_v19, %v2594_v25 }
  0x35   : > { %970 = vmatpush.msra.mxu2 %v790_v18  ;;  %v2629_v41 = vand.u32 4294901760, %v334_v38  ;;  %3329 = vst [vmem:[#allocation9_spill] sm:$0xff] %v2632_v42  ;;  %v342_v45 = vsub.f32 %v2624_v39, %v2632_v42  ;;  %v2650_v49 = vand.u32 4294901760, %v2642_v46  ;;  %v293_v54 = vsel %vm273_vm1, %v270_v51, 0 }
  0x36   : > { %v2598_v29 = vand.u32 4294901760, %v318_v24  ;;  %400 = vmatpush.msra.mxu1 %v399_v27  ;;  %793 = vmatpush.msrb.mxu3 %v792_v28  ;;  %v2611_v34 = vand.u32 4294901760, %v326_v31  ;;  %v2668_v56 = vand.u32 4294901760, %v2660_v53  ;;  %v2670_v57 = vand.u32 4294901760, %v293_v54 }
  0x37   : > { %402 = vmatmul.f32.vlgmr.msra.gmra.mxu1 %v2573_v10  ;;  %v2647_v48 = vand.u32 4294901760, %v342_v45  ;;  %v350_v52 = vsub.f32 %v2642_v46, %v2650_v49  ;;  %v296_v61 = vsel %vm273_vm1, %v271_v58, 0 }
  0x38   : > { %320 = vmatmul.f32.vlgmr.msra.gmra.mxu0 %v2598_v29  ;;  %627 = vmatpush.msrb.mxu1 %v313_v6  ;;  %3330 = vst [vmem:[#allocation10_spill] sm:$0xff] %v2668_v56  ;;  %v358_v59 = vsub.f32 %v2660_v53, %v2668_v56  ;;  %v2678_v60 = vsub.f32 %v293_v54, %v2670_v57  ;;  %v2688_v0 = vand.u32 4294901760, %v296_v61 }
  0x39   : > { %844 = vmatpush.msra.mxu0 %v789_v14  ;;  %1020 = vmatpush.msra.mxu3 %v706_v8  ;;  %v2665_v55 = vand.u32 4294901760, %v350_v52 }
  0x3a   : > { %459 = vmatmul.f32.gmra.mxu2 %v2583_v19  ;;  %902 = vmatpush.msra.mxu1 %v706_v8  ;;  %v2683_v62 = vand.u32 4294901760, %v358_v59  ;;  %v2686_v63 = vand.u32 4294901760, %v2678_v60  ;;  %v2695_v2 = vsub.f32 %v296_v61, %v2688_v0  ;;  %v1096_v8 = vand.u32 4294901760, %v2216_v7 }
  0x3c   : > { %519 = vmatmul.f32.gmra.mxu3 %v2594_v25  ;;  %v366_v1 = vsub.f32 %v2678_v60, %v2686_v63  ;;  %v2702_v4 = vand.u32 4294901760, %v2695_v2  ;;  %v1179_v9 = vsub.f32 %v2216_v7, %v1096_v8 }
  0x3e   : > { %v2699_v3 = vand.u32 4294901760, %v366_v1  ;;  %v374_v5 = vsub.f32 %v2695_v2, %v2702_v4  ;;  %v1180_v11 = vand.u32 4294901760, %v1179_v9 }
  0x3f   : > { %406 = vmatmul.f32.gmra.mxu1 %v2577_v15 }
  0x40   : > { %328 = vmatmul.f32.gmra.mxu0 %v2611_v34  ;;  %v2710_v6 = vand.u32 4294901760, %v374_v5  ;;  %v1181_v12 = vsub.f32 %v1179_v9, %v1180_v11 }
  0x42   : > { %464 = vmatmul.f32.gmra.mxu2 %v2606_v32  ;;  %v1182_v13 = vand.u32 4294901760, %v1181_v12 }
  0x44   : > { %525 = vmatmul.f32.gmra.mxu3 %v2614_v35 }
  0x47   : > { %410 = vmatmul.f32.gmra.mxu1 %v2596_v26 }
  0x48   : > { %336 = vmatmul.f32.gmra.mxu0 %v2629_v41 }
  0x4a   : > { %469 = vmatmul.f32.gmra.mxu2 %v2624_v39 }
  0x4c   : > { %531 = vmatmul.f32.gmra.mxu3 %v2632_v42 }
  0x4f   : > { %414 = vmatmul.f32.gmra.mxu1 %v2616_v36 }
  0x50   : > { %344 = vmatmul.f32.gmra.mxu0 %v2647_v48 }
  0x52   : > { %474 = vmatmul.f32.gmra.mxu2 %v2642_v46 }
  0x54   : > { %537 = vmatmul.f32.gmra.mxu3 %v2650_v49 }
  0x57   : > { %418 = vmatmul.f32.gmra.mxu1 %v2634_v43 }
  0x58   : > { %352 = vmatmul.f32.gmra.mxu0 %v2665_v55 }
  0x5a   : > { %479 = vmatmul.f32.gmra.mxu2 %v2660_v53 }
  0x5c   : > { %543 = vmatmul.f32.gmra.mxu3 %v2668_v56 }
  0x5f   : > { %422 = vmatmul.f32.gmra.mxu1 %v2652_v50 }
  0x60   : > { %360 = vmatmul.f32.gmra.mxu0 %v2683_v62 }
  0x62   : > { %484 = vmatmul.f32.gmra.mxu2 %v2678_v60 }
  0x64   : > { %549 = vmatmul.f32.gmra.mxu3 %v2686_v63 }
  0x67   : > { %426 = vmatmul.f32.gmra.mxu1 %v2670_v57 }
  0x68   : > { %368 = vmatmul.f32.gmra.mxu0 %v2699_v3 }
  0x6a   : > { %489 = vmatmul.f32.gmra.mxu2 %v2695_v2 }
  0x6c   : > { %555 = vmatmul.f32.gmra.mxu3 %v2702_v4 }
  0x6f   : > { %430 = vmatmul.f32.gmra.mxu1 %v2688_v0 }
  0x70   : > { %376 = vmatmul.f32.gmra.mxu0 %v2710_v6 }
  0x72   : > { %713 = vmatmul.f32.vlgmr.msrb.gmra.mxu2 %v2598_v29 }
  0x73   : > { %1234 = vmatpush.msrb.mxu2 %v1179_v9 }
  0x74   : > { %795 = vmatmul.f32.vlgmr.msrb.gmra.mxu3 %v2573_v10 }
  0x75   : > { %1292 = vmatpush.msrb.mxu3 %v1096_v8 }
  0x77   : > { %629 = vmatmul.f32.vlgmr.msrb.gmra.mxu1 %v2573_v10 }
  0x78   : > { %579 = vmatmul.f32.vlgmr.msrb.gmra.mxu0 %v2573_v10  ;;  %1183 = vmatpush.msrb.mxu1 %v1182_v13 }
  0x79   : > { %1097 = vmatpush.msrb.mxu0 %v1096_v8 }
  0x7a   : > { %721 = vmatmul.f32.gmra.mxu2 %v2611_v34 }
  0x7c   : > { %799 = vmatmul.f32.gmra.mxu3 %v2577_v15 }
  0x7f   : > { %633 = vmatmul.f32.gmra.mxu1 %v2577_v15 }
  0x80   : > { %583 = vmatmul.f32.gmra.mxu0 %v2577_v15 }
  0x82   : > { %729 = vmatmul.f32.gmra.mxu2 %v2629_v41 }
  0x84   : > { %803 = vmatmul.f32.gmra.mxu3 %v2596_v26 }
  0x87   : > { %637 = vmatmul.f32.gmra.mxu1 %v2596_v26 }
  0x88   : > { %587 = vmatmul.f32.gmra.mxu0 %v2596_v26 }
  0x8a   : > { %737 = vmatmul.f32.gmra.mxu2 %v2647_v48 }
  0x8c   : > { %807 = vmatmul.f32.gmra.mxu3 %v2616_v36 }
  0x8f   : > { %641 = vmatmul.f32.gmra.mxu1 %v2616_v36 }
  0x90   : > { %591 = vmatmul.f32.gmra.mxu0 %v2616_v36 }
  0x92   : > { %745 = vmatmul.f32.gmra.mxu2 %v2665_v55 }
  0x94   : > { %811 = vmatmul.f32.gmra.mxu3 %v2634_v43 }
  0x97   : > { %645 = vmatmul.f32.gmra.mxu1 %v2634_v43 }
  0x98   : > { %595 = vmatmul.f32.gmra.mxu0 %v2634_v43 }
  0x9a   : > { %753 = vmatmul.f32.gmra.mxu2 %v2683_v62 }
  0x9c   : > { %815 = vmatmul.f32.gmra.mxu3 %v2652_v50 }
  0x9f   : > { %649 = vmatmul.f32.gmra.mxu1 %v2652_v50 }
  0xa0   : > { %599 = vmatmul.f32.gmra.mxu0 %v2652_v50 }
  0xa2   : > { %761 = vmatmul.f32.gmra.mxu2 %v2699_v3 }
  0xa4   : > { %819 = vmatmul.f32.gmra.mxu3 %v2670_v57 }
  0xa7   : > { %653 = vmatmul.f32.gmra.mxu1 %v2670_v57 }
  0xa8   : > { %603 = vmatmul.f32.gmra.mxu0 %v2670_v57 }
  0xaa   : > { %769 = vmatmul.f32.gmra.mxu2 %v2710_v6 }
  0xac   : > { %823 = vmatmul.f32.gmra.mxu3 %v2688_v0 }
  0xaf   : > { %657 = vmatmul.f32.gmra.mxu1 %v2688_v0 }
  0xb0   : > { %607 = vmatmul.f32.gmra.mxu0 %v2688_v0 }
  0xb2   : > { %972 = vmatmul.f32.vlgmr.msra.gmra.mxu2 %v2573_v10 }
  0xb4   : > { %1022 = vmatmul.f32.vlgmr.msra.gmra.mxu3 %v2573_v10  ;;  %v403_v17 = vpop.f32.mrf.mxu1 }
  0xb5   : > { %v321_v14 = vpop.f32.mrf.mxu0  ;;  %v455_v20 = vpop.f32.mrf.mxu2 }
  0xb6   : > { %v404_v18 = vadd.f32 %v403_v17, %v321_v14 }
  0xb7   : > { %v514_v22 = vpop.f32.mrf.mxu3  ;;  %906 = vmatmul.f32.vlgmr.msra.gmra.mxu1 %v2588_v21 }
  0xb8   : > { %v456_v23 = vadd.f32 %v455_v20, %v404_v18  ;;  %847 = vmatmul.f32.vlgmr.msra.gmra.mxu0 %v2580_v16  ;;  %1410 = vmatpush.msra.mxu1 %v1096_v8  ;;  %v2219_v20 = vld [vmem:[%s2553_s10 + $0x18] sm:$0xff]  ;;  %s2338_s10 = sshra.s32 %s2080_s8, 4  ;;  %s2339_s10 = int_to_ptr.hbm [resolvable:$true] %s2338_s10 }
  0xb9   : > { %1360 = vmatpush.msra.mxu0 %v1180_v11  ;;  %s2340_s11 = scalar_lea.hbm %s2339_s10, 4  ;;  %p2345_p5 = scmp.lt.s32.totalorder %s2339_s10, %s3320_s3 }
  0xba   : > { %v2751_v24 = vadd.f32 %v514_v22, %v456_v23  ;;  %976 = vmatmul.f32.gmra.mxu2 %v2577_v15  ;;  %v1486_v22 = vand.u32 4294901760, %v2219_v20  ;;  %p2341_p1 = scmp.ne.s32.totalorder %s2339_s10, %s2340_s11  ;;  %p2346_p6 = scmp.lt.s32.totalorder %s2344_s26, %s2340_s11 }
  0xbc   : > { %1026 = vmatmul.f32.gmra.mxu3 %v2577_v15  ;;  %v407_v28 = vpop.f32.mrf.mxu1  ;;  %1487 = vmatpush.msra.mxu2 %v1486_v22  ;;  %p2342_p2 = pnand %p2341_p1, %p2523_p3  ;;  %p2347_p7 = por %p2346_p6, %p2345_p5 }
  0xbd   : > { %v329_v27 = vpop.f32.mrf.mxu0  ;;  %v460_v31 = vpop.f32.mrf.mxu2 }
  0xbe   : > { %v408_v30 = vadd.f32 %v407_v28, %v329_v27  ;;  %v1569_v28 = vsub.f32 %v2219_v20, %v1486_v22  ;;  %p2343_p4 = pneg %p2342_p2 }
  0xbf   : > { %v520_v33 = vpop.f32.mrf.mxu3  ;;  %912 = vmatmul.f32.gmra.mxu1 %v2594_v25 }
  0xc0   : > { %v461_v37 = vadd.f32 %v460_v31, %v408_v30  ;;  %852 = vmatmul.f32.gmra.mxu0 %v2583_v19  ;;  %p2348_p8 = pnand %p2347_p7, %p2343_p4 }
  0xc2   : > { %v2757_v38 = vadd.f32 %v520_v33, %v461_v37  ;;  %980 = vmatmul.f32.gmra.mxu2 %v2596_v26  ;;  %v1570_v37 = vand.u32 4294901760, %v1569_v28 }
  0xc4   : > { %1030 = vmatmul.f32.gmra.mxu3 %v2596_v26  ;;  %v411_v44 = vpop.f32.mrf.mxu1 }
  0xc5   : > { %v337_v40 = vpop.f32.mrf.mxu0  ;;  %v465_v47 = vpop.f32.mrf.mxu2 }
  0xc6   : > { %v412_v45 = vadd.f32 %v411_v44, %v337_v40  ;;  %v1571_v44 = vsub.f32 %v1569_v28, %v1570_v37 }
  0xc7   : > { %v526_v51 = vpop.f32.mrf.mxu3  ;;  %918 = vmatmul.f32.gmra.mxu1 %v2614_v35 }
  0xc8   : > { %v466_v52 = vadd.f32 %v465_v47, %v412_v45  ;;  %857 = vmatmul.f32.gmra.mxu0 %v2606_v32  ;;  %v1572_v47 = vand.u32 4294901760, %v1571_v44 }
  0xca   : > { %v2763_v54 = vadd.f32 %v526_v51, %v466_v52  ;;  %984 = vmatmul.f32.gmra.mxu2 %v2616_v36  ;;  %1573 = vmatpush.msra.mxu3 %v1572_v47 }
  0xcc   : > { %1034 = vmatmul.f32.gmra.mxu3 %v2616_v36  ;;  %v415_v59 = vpop.f32.mrf.mxu1 }
  0xcd   : > { %v345_v58 = vpop.f32.mrf.mxu0  ;;  %v470_v1 = vpop.f32.mrf.mxu2 }
  0xce   : > { %v416_v61 = vadd.f32 %v415_v59, %v345_v58 }
  0xcf   : > { %v532_v5 = vpop.f32.mrf.mxu3  ;;  %924 = vmatmul.f32.gmra.mxu1 %v2632_v42 }
  0xd0   : > { %v471_v7 = vadd.f32 %v470_v1, %v416_v61  ;;  %862 = vmatmul.f32.gmra.mxu0 %v2624_v39 }
  0xd2   : > { %v2769_v8 = vadd.f32 %v532_v5, %v471_v7  ;;  %988 = vmatmul.f32.gmra.mxu2 %v2634_v43 }
  0xd4   : > { %1038 = vmatmul.f32.gmra.mxu3 %v2634_v43  ;;  %v419_v11 = vpop.f32.mrf.mxu1 }
  0xd5   : > { %v353_v9 = vpop.f32.mrf.mxu0  ;;  %v475_v13 = vpop.f32.mrf.mxu2 }
  0xd6   : > { %v420_v12 = vadd.f32 %v419_v11, %v353_v9 }
  0xd7   : > { %v538_v14 = vpop.f32.mrf.mxu3  ;;  %930 = vmatmul.f32.gmra.mxu1 %v2650_v49 }
  0xd8   : > { %v476_v17 = vadd.f32 %v475_v13, %v420_v12  ;;  %867 = vmatmul.f32.gmra.mxu0 %v2642_v46 }
  0xda   : > { %v2775_v18 = vadd.f32 %v538_v14, %v476_v17  ;;  %992 = vmatmul.f32.gmra.mxu2 %v2652_v50 }
  0xdc   : > { %1042 = vmatmul.f32.gmra.mxu3 %v2652_v50  ;;  %v423_v27 = vpop.f32.mrf.mxu1 }
  0xdd   : > { %v361_v23 = vpop.f32.mrf.mxu0  ;;  %v480_v31 = vpop.f32.mrf.mxu2 }
  0xde   : > { %v424_v30 = vadd.f32 %v423_v27, %v361_v23 }
  0xdf   : > { %v544_v33 = vpop.f32.mrf.mxu3  ;;  %936 = vmatmul.f32.gmra.mxu1 %v2668_v56 }
  0xe0   : > { %v481_v40 = vadd.f32 %v480_v31, %v424_v30  ;;  %872 = vmatmul.f32.gmra.mxu0 %v2660_v53 }
  0xe2   : > { %v2782_v45 = vadd.f32 %v544_v33, %v481_v40  ;;  %996 = vmatmul.f32.gmra.mxu2 %v2670_v57 }
  0xe4   : > { %1046 = vmatmul.f32.gmra.mxu3 %v2670_v57  ;;  %v427_v52 = vpop.f32.mrf.mxu1 }
  0xe5   : > { %v369_v51 = vpop.f32.mrf.mxu0  ;;  %v485_v59 = vpop.f32.mrf.mxu2 }
  0xe6   : > { %v428_v58 = vadd.f32 %v427_v52, %v369_v51 }
  0xe7   : > { %v550_v61 = vpop.f32.mrf.mxu3  ;;  %942 = vmatmul.f32.gmra.mxu1 %v2686_v63 }
  0xe8   : > { %v486_v1 = vadd.f32 %v485_v59, %v428_v58  ;;  %877 = vmatmul.f32.gmra.mxu0 %v2678_v60 }
  0xea   : > { %v2788_v5 = vadd.f32 %v550_v61, %v486_v1  ;;  %1000 = vmatmul.f32.gmra.mxu2 %v2688_v0 }
  0xec   : > { %1050 = vmatmul.f32.gmra.mxu3 %v2688_v0  ;;  %v2794_v9 = vpop.f32.mrf.mxu1 }
  0xed   : > { %v2792_v7 = vpop.f32.mrf.mxu0  ;;  %v2796_v11 = vpop.f32.mrf.mxu2 }
  0xef   : > { %v2798_v12 = vpop.f32.mrf.mxu3  ;;  %948 = vmatmul.f32.gmra.mxu1 %v2702_v4 }
  0xf0   : > { %882 = vmatmul.f32.gmra.mxu0 %v2695_v2 }
  0xf2   : > { %1237 = vmatmul.f32.vlgmr.msrb.gmra.mxu2 %v2580_v16 }
  0xf3   : > { %1750 = vmatpush.msrb.mxu2 %v1570_v37 }
  0xf4   : > { %1296 = vmatmul.f32.vlgmr.msrb.gmra.mxu3 %v2588_v21  ;;  %v630_v14 = vpop.f32.mrf.mxu1 }
  0xf5   : > { %v580_v13 = vpop.f32.mrf.mxu0  ;;  %1800 = vmatpush.msrb.mxu3 %v1486_v22  ;;  %v714_v17 = vpop.f32.mrf.mxu2 }
  0xf6   : > { %v581_v1 = vadd.f32 %v580_v13, %v2751_v24 }
  0xf7   : > { %v796_v20 = vpop.f32.mrf.mxu3  ;;  %1185 = vmatmul.f32.vlgmr.msrb.gmra.mxu1 %v2573_v10 }
  0xf8   : > { %1103 = vmatmul.f32.vlgmr.msrb.gmra.mxu0 %v2598_v29  ;;  %v2806_v23 = vadd.f32 %v796_v20, %v714_v17  ;;  %1682 = vmatpush.msrb.mxu1 %v1486_v22 }
  0xf9   : > { %1624 = vmatpush.msrb.mxu0 %v1569_v28 }
  0xfa   : > { %1242 = vmatmul.f32.gmra.mxu2 %v2583_v19 }
  0xfc   : > { %1302 = vmatmul.f32.gmra.mxu3 %v2594_v25  ;;  %v634_v30 = vpop.f32.mrf.mxu1 }
  0xfd   : > { %v584_v27 = vpop.f32.mrf.mxu0  ;;  %v722_v31 = vpop.f32.mrf.mxu2 }
  0xfe   : > { %v585_v13 = vadd.f32 %v584_v27, %v2757_v38 }
  0xff   : > { %v800_v33 = vpop.f32.mrf.mxu3  ;;  %1189 = vmatmul.f32.gmra.mxu1 %v2577_v15 }
 0x100   : > { %1111 = vmatmul.f32.gmra.mxu0 %v2611_v34  ;;  %v2812_v37 = vadd.f32 %v800_v33, %v722_v31 }
 0x102   : > { %1247 = vmatmul.f32.gmra.mxu2 %v2606_v32 }
 0x104   : > { %1308 = vmatmul.f32.gmra.mxu3 %v2614_v35  ;;  %v638_v22 = vpop.f32.mrf.mxu1 }
 0x105   : > { %v588_v28 = vpop.f32.mrf.mxu0  ;;  %v730_v40 = vpop.f32.mrf.mxu2 }
 0x106   : > { %v589_v27 = vadd.f32 %v588_v28, %v2763_v54 }
 0x107   : > { %v804_v44 = vpop.f32.mrf.mxu3  ;;  %1193 = vmatmul.f32.gmra.mxu1 %v2596_v26 }
 0x108   : > { %1119 = vmatmul.f32.gmra.mxu0 %v2629_v41  ;;  %v2818_v47 = vadd.f32 %v804_v44, %v730_v40  ;;  %v2830_v44 = vadd.f32 %v630_v14, %v581_v1 }
 0x10a   : > { %1252 = vmatmul.f32.gmra.mxu2 %v2624_v39 }
 0x10c   : > { %1314 = vmatmul.f32.gmra.mxu3 %v2632_v42  ;;  %v642_v52 = vpop.f32.mrf.mxu1 }
 0x10d   : > { %v592_v51 = vpop.f32.mrf.mxu0  ;;  %v738_v58 = vpop.f32.mrf.mxu2 }
 0x10f   : > { %v808_v59 = vpop.f32.mrf.mxu3  ;;  %1197 = vmatmul.f32.gmra.mxu1 %v2616_v36 }
 0x110   : > { %1127 = vmatmul.f32.gmra.mxu0 %v2647_v48  ;;  %v2824_v61 = vadd.f32 %v808_v59, %v738_v58 }
 0x112   : > { %1257 = vmatmul.f32.gmra.mxu2 %v2642_v46 }
 0x114   : > { %1320 = vmatmul.f32.gmra.mxu3 %v2650_v49  ;;  %v646_v20 = vpop.f32.mrf.mxu1 }
 0x115   : > { %v596_v17 = vpop.f32.mrf.mxu0  ;;  %v746_v33 = vpop.f32.mrf.mxu2 }
 0x116   : > { %v597_v31 = vadd.f32 %v596_v17, %v2775_v18 }
 0x117   : > { %v812_v40 = vpop.f32.mrf.mxu3  ;;  %1201 = vmatmul.f32.gmra.mxu1 %v2634_v43 }
 0x118   : > { %v2832_v42 = vadd.f32 %v646_v20, %v597_v31  ;;  %1135 = vmatmul.f32.gmra.mxu0 %v2665_v55  ;;  %v2836_v58 = vadd.f32 %v812_v40, %v746_v33  ;;  %v2844_v20 = vadd.f32 %v634_v30, %v585_v13 }
 0x11a   : > { %v669_v24 = vmin.f32 %v2830_v44, %v2832_v42  ;;  %1262 = vmatmul.f32.gmra.mxu2 %v2660_v53 }
 0x11c   : > { %1326 = vmatmul.f32.gmra.mxu3 %v2668_v56  ;;  %v650_v14 = vpop.f32.mrf.mxu1 }
 0x11d   : > { %v600_v18 = vpop.f32.mrf.mxu0  ;;  %v754_v1 = vpop.f32.mrf.mxu2 }
 0x11e   : > { %v601_v59 = vadd.f32 %v600_v18, %v2782_v45  ;;  %v432_v45 = vadd.f32 %v2794_v9, %v2792_v7  ;;  %v593_v9 = vadd.f32 %v592_v51, %v2769_v8 }
 0x11f   : > { %v816_v17 = vpop.f32.mrf.mxu3  ;;  %1205 = vmatmul.f32.gmra.mxu1 %v2652_v50 }
 0x120   : > { %v2846_v31 = vadd.f32 %v650_v14, %v601_v59  ;;  %1143 = vmatmul.f32.gmra.mxu0 %v2683_v62  ;;  %v2850_v33 = vadd.f32 %v816_v17, %v754_v1  ;;  %v491_v59 = vadd.f32 %v2796_v11, %v432_v45  ;;  %v2861_v17 = vadd.f32 %v638_v22, %v589_v27 }
 0x121   : > { %v2879_v45 = vadd.f32 %v642_v52, %v593_v9 }
 0x122   : > { %v670_v38 = vmin.f32 %v2844_v20, %v2846_v31  ;;  %1267 = vmatmul.f32.gmra.mxu2 %v2678_v60 }
 0x124   : > { %v673_v30 = vmin.f32 %v669_v24, %v670_v38  ;;  %1332 = vmatmul.f32.gmra.mxu3 %v2686_v63  ;;  %v654_v13 = vpop.f32.mrf.mxu1 }
 0x125   : > { %v604_v40 = vpop.f32.mrf.mxu0  ;;  %v762_v14 = vpop.f32.mrf.mxu2 }
 0x126   : > { %v605_v18 = vadd.f32 %v604_v40, %v2788_v5  ;;  %v557_v5 = vadd.f32 %v2798_v12, %v491_v59 }
 0x127   : > { %v820_v1 = vpop.f32.mrf.mxu3  ;;  %1209 = vmatmul.f32.gmra.mxu1 %v2670_v57 }
 0x128   : > { %v2863_v56 = vadd.f32 %v654_v13, %v605_v18  ;;  %1151 = vmatmul.f32.gmra.mxu0 %v2699_v3  ;;  %v2867_v54 = vadd.f32 %v820_v1, %v762_v14 }
 0x12a   : > { %v671_v7 = vmin.f32 %v2861_v17, %v2863_v56  ;;  %1272 = vmatmul.f32.gmra.mxu2 %v2695_v2 }
 0x12c   : > { %1338 = vmatmul.f32.gmra.mxu3 %v2702_v4  ;;  %v658_v28 = vpop.f32.mrf.mxu1 }
 0x12d   : > { %v608_v11 = vpop.f32.mrf.mxu0  ;;  %v2875_v24 = vpop.f32.mrf.mxu2 }
 0x12e   : > { %v609_v22 = vadd.f32 %v608_v11, %v557_v5 }
 0x12f   : > { %v2877_v38 = vpop.f32.mrf.mxu3  ;;  %1213 = vmatmul.f32.gmra.mxu1 %v2688_v0 }
 0x130   : > { %v2881_v27 = vadd.f32 %v658_v28, %v609_v22  ;;  %1159 = vmatmul.f32.gmra.mxu0 %v2710_v6 }
 0x132   : > { %v672_v8 = vmin.f32 %v2879_v45, %v2881_v27  ;;  %1493 = vmatmul.f32.vlgmr.msra.gmra.mxu2 %v2598_v29  ;;  %v661_v29 = vmin.f32 %v2830_v44, 1e+30  ;;  %v682_v44 = vld [vmem:[%s2563_s23] sm:$0x1] }
 0x134   : > { %v674_v12 = vmin.f32 %v671_v7, %v672_v8  ;;  %1575 = vmatmul.f32.vlgmr.msra.gmra.mxu3 %v2573_v10  ;;  %v907_v40 = vpop.f32.mrf.mxu1 }
 0x135   : > { %v848_v51 = vpop.f32.mrf.mxu0  ;;  %v973_v18 = vpop.f32.mrf.mxu2 }
 0x136   : > { %v675_v13 = vmin.f32 %v673_v30, %v674_v12  ;;  %v849_v52 = vadd.f32 %v848_v51, %v2806_v23 }
 0x137   : > { %v1023_v14 = vpop.f32.mrf.mxu3  ;;  %1412 = vmatmul.f32.vlgmr.msra.gmra.mxu1 %v2573_v10 }
 0x138   : > { %v676_v59 = vrot.slane %v675_v13, 4  ;;  %v908_v1 = vadd.f32 %v907_v40, %v849_v52  ;;  %1362 = vmatmul.f32.vlgmr.msra.gmra.mxu0 %v2573_v10  ;;  %v684_v40 = vlaneseq }
 0x13a   : > { %v677_v5 = vmin.f32 %v675_v13, %v676_v59  ;;  %v974_v9 = vadd.f32 %v973_v18, %v908_v1  ;;  %1501 = vmatmul.f32.gmra.mxu2 %v2611_v34  ;;  %vm2906_vm2 = vcmp.lt.s32.totalorder %v684_v40, 128 }
 0x13c   : > { %v678_v7 = vrot.slane %v677_v5, 2  ;;  %v2894_v11 = vadd.f32 %v1023_v14, %v974_v9  ;;  %1579 = vmatmul.f32.gmra.mxu3 %v2577_v15  ;;  %v913_v30 = vpop.f32.mrf.mxu1 }
 0x13d   : > { %v853_v23 = vpop.f32.mrf.mxu0  ;;  %v977_v12 = vpop.f32.mrf.mxu2 }
 0x13e   : > { %v679_v28 = vmin.f32 %v677_v5, %v678_v7  ;;  %v2898_v22 = vmin.f32 %v661_v29, %v2894_v11  ;;  %v854_v8 = vadd.f32 %v853_v23, %v2812_v37  ;;  %v662_v37 = vmin.f32 %v2844_v20, 1e+30 }
 0x13f   : > { %v1027_v51 = vpop.f32.mrf.mxu3  ;;  %1416 = vmatmul.f32.gmra.mxu1 %v2577_v15 }
 0x140   : > { %v680_v34 = vrot.slane %v679_v28, 1  ;;  %v914_v13 = vadd.f32 %v913_v30, %v854_v8  ;;  %1366 = vmatmul.f32.gmra.mxu0 %v2577_v15 }
 0x142   : > { %v681_v52 = vmin.f32 %v679_v28, %v680_v34  ;;  %v978_v18 = vadd.f32 %v977_v12, %v914_v13  ;;  %1509 = vmatmul.f32.gmra.mxu2 %v2629_v41  ;;  %v663_v28 = vmin.f32 %v2861_v17, 1e+30  ;;  %v664_v17 = vmin.f32 %v2879_v45, 1e+30 }
 0x143   : > { %v665_v45 = vmin.f32 %v2832_v42, 1e+30  ;;  %v666_v42 = vmin.f32 %v2846_v31, 1e+30  ;;  %v667_v31 = vmin.f32 %v2863_v56, 1e+30 }
 0x144   : > { %v2911_v59 = vadd.f32 %v1027_v51, %v978_v18  ;;  %1583 = vmatmul.f32.gmra.mxu3 %v2596_v26  ;;  %v683_v1 = vmin.f32 %v682_v44, %v681_v52  ;;  %v919_v9 = vpop.f32.mrf.mxu1 }
 0x145   : > { %v858_v5 = vpop.f32.mrf.mxu0  ;;  %v981_v41 = vpop.f32.mrf.mxu2 }
 0x146   : > { %v2915_v29 = vmin.f32 %v662_v37, %v2911_v59  ;;  %v859_v7 = vadd.f32 %v858_v5, %v2818_v47  ;;  %688 = vst.msk [vmem:[%s2563_s23] sm:$0x1] %vm2906_vm2, %v683_v1 }
 0x147   : > { %v1031_v23 = vpop.f32.mrf.mxu3  ;;  %1420 = vmatmul.f32.gmra.mxu1 %v2596_v26 }
 0x148   : > { %v920_v30 = vadd.f32 %v919_v9, %v859_v7  ;;  %1370 = vmatmul.f32.gmra.mxu0 %v2596_v26 }
 0x14a   : > { %v982_v20 = vadd.f32 %v981_v41, %v920_v30  ;;  %1517 = vmatmul.f32.gmra.mxu2 %v2647_v48 }
 0x14c   : > { %v2925_v8 = vadd.f32 %v1031_v23, %v982_v20  ;;  %1587 = vmatmul.f32.gmra.mxu3 %v2616_v36  ;;  %v925_v12 = vpop.f32.mrf.mxu1 }
 0x14d   : > { %v863_v47 = vpop.f32.mrf.mxu0  ;;  %v985_v13 = vpop.f32.mrf.mxu2 }
 0x14e   : > { %v2929_v51 = vmin.f32 %v663_v28, %v2925_v8  ;;  %v864_v34 = vadd.f32 %v863_v47, %v2824_v61 }
 0x14f   : > { %v1035_v44 = vpop.f32.mrf.mxu3  ;;  %1424 = vmatmul.f32.gmra.mxu1 %v2616_v36 }
 0x150   : > { %v926_v52 = vadd.f32 %v925_v12, %v864_v34  ;;  %1374 = vmatmul.f32.gmra.mxu0 %v2616_v36 }
 0x152   : > { %v986_v48 = vadd.f32 %v985_v13, %v926_v52  ;;  %1525 = vmatmul.f32.gmra.mxu2 %v2665_v55 }
 0x154   : > { %v2936_v18 = vadd.f32 %v1035_v44, %v986_v48  ;;  %1591 = vmatmul.f32.gmra.mxu3 %v2634_v43  ;;  %v931_v1 = vpop.f32.mrf.mxu1 }
 0x155   : > { %v868_v37 = vpop.f32.mrf.mxu0  ;;  %v989_v9 = vpop.f32.mrf.mxu2 }
 0x156   : > { %v2940_v61 = vmin.f32 %v664_v17, %v2936_v18  ;;  %v869_v5 = vadd.f32 %v868_v37, %v2836_v58 }
 0x157   : > { %v1039_v7 = vpop.f32.mrf.mxu3  ;;  %1428 = vmatmul.f32.gmra.mxu1 %v2634_v43 }
 0x158   : > { %v932_v41 = vadd.f32 %v931_v1, %v869_v5  ;;  %1378 = vmatmul.f32.gmra.mxu0 %v2634_v43 }
 0x15a   : > { %v990_v55 = vadd.f32 %v989_v9, %v932_v41  ;;  %1533 = vmatmul.f32.gmra.mxu2 %v2683_v62 }
 0x15c   : > { %v1040_v23 = vadd.f32 %v1039_v7, %v990_v55  ;;  %1595 = vmatmul.f32.gmra.mxu3 %v2652_v50  ;;  %v937_v20 = vpop.f32.mrf.mxu1  ;;  %v825_v7 = vadd.f32 %v2877_v38, %v2875_v24 }
 0x15d   : > { %v873_v30 = vpop.f32.mrf.mxu0  ;;  %v993_v12 = vpop.f32.mrf.mxu2 }
 0x15e   : > { %v2948_v28 = vmin.f32 %v665_v45, %v1040_v23  ;;  %v1062_v58 = vmin.f32 %v2894_v11, %v1040_v23  ;;  %v874_v47 = vadd.f32 %v873_v30, %v2850_v33 }
 0x15f   : > { %v1043_v34 = vpop.f32.mrf.mxu3  ;;  %1432 = vmatmul.f32.gmra.mxu1 %v2652_v50 }
 0x160   : > { %v938_v13 = vadd.f32 %v937_v20, %v874_v47  ;;  %1382 = vmatmul.f32.gmra.mxu0 %v2652_v50 }
 0x162   : > { %v994_v62 = vadd.f32 %v993_v12, %v938_v13  ;;  %1541 = vmatmul.f32.gmra.mxu2 %v2699_v3 }
 0x164   : > { %v1044_v44 = vadd.f32 %v1043_v34, %v994_v62  ;;  %1599 = vmatmul.f32.gmra.mxu3 %v2670_v57  ;;  %v943_v48 = vpop.f32.mrf.mxu1 }
 0x165   : > { %v878_v52 = vpop.f32.mrf.mxu0  ;;  %v997_v37 = vpop.f32.mrf.mxu2 }
 0x166   : > { %v2957_v11 = vmin.f32 %v666_v42, %v1044_v44  ;;  %v1063_v33 = vmin.f32 %v2911_v59, %v1044_v44  ;;  %v879_v17 = vadd.f32 %v878_v52, %v2867_v54 }
 0x167   : > { %v1047_v1 = vpop.f32.mrf.mxu3  ;;  %1436 = vmatmul.f32.gmra.mxu1 %v2670_v57 }
 0x168   : > { %v1066_v5 = vmin.f32 %v1062_v58, %v1063_v33  ;;  %v944_v9 = vadd.f32 %v943_v48, %v879_v17  ;;  %1386 = vmatmul.f32.gmra.mxu0 %v2670_v57 }
 0x16a   : > { %v998_v3 = vadd.f32 %v997_v37, %v944_v9  ;;  %1549 = vmatmul.f32.gmra.mxu2 %v2710_v6  ;;  %v668_v6 = vmin.f32 %v2881_v27, 1e+30 }
 0x16c   : > { %v1048_v41 = vadd.f32 %v1047_v1, %v998_v3  ;;  %1603 = vmatmul.f32.gmra.mxu3 %v2688_v0  ;;  %v949_v59 = vpop.f32.mrf.mxu1 }
 0x16d   : > { %v883_v54 = vpop.f32.mrf.mxu0  ;;  %v1001_v30 = vpop.f32.mrf.mxu2 }
 0x16e   : > { %v2968_v55 = vmin.f32 %v667_v31, %v1048_v41  ;;  %v1064_v45 = vmin.f32 %v2925_v8, %v1048_v41  ;;  %v884_v23 = vadd.f32 %v883_v54, %v825_v7  ;;  %v2214_v7 = vld [vmem:[%s2563_s23 + $0x1] sm:$0x1] }
 0x16f   : > { %v1051_v20 = vpop.f32.mrf.mxu3  ;;  %1440 = vmatmul.f32.gmra.mxu1 %v2688_v0 }
 0x170   : > { %v950_v58 = vadd.f32 %v949_v59, %v884_v23  ;;  %1390 = vmatmul.f32.gmra.mxu0 %v2688_v0 }
 0x172   : > { %v1002_v56 = vadd.f32 %v1001_v30, %v950_v58  ;;  %1752 = vmatmul.f32.vlgmr.msrb.gmra.mxu2 %v2573_v10 }
 0x174   : > { %v1052_v24 = vadd.f32 %v1051_v20, %v1002_v56  ;;  %1802 = vmatmul.f32.vlgmr.msrb.gmra.mxu3 %v2573_v10  ;;  %v1186_v47 = vpop.f32.mrf.mxu1 }
 0x175   : > { %v1104_v38 = vpop.f32.mrf.mxu0  ;;  %v1238_v13 = vpop.f32.mrf.mxu2 }
 0x176   : > { %v2976_v12 = vmin.f32 %v668_v6, %v1052_v24  ;;  %v1065_v8 = vmin.f32 %v2936_v18, %v1052_v24  ;;  %v1187_v34 = vadd.f32 %v1186_v47, %v1104_v38 }
 0x177   : > { %v1297_v62 = vpop.f32.mrf.mxu3  ;;  %1686 = vmatmul.f32.vlgmr.msrb.gmra.mxu1 %v2588_v21 }
 0x178   : > { %v1067_v42 = vmin.f32 %v1064_v45, %v1065_v8  ;;  %v1239_v44 = vadd.f32 %v1238_v13, %v1187_v34  ;;  %1627 = vmatmul.f32.vlgmr.msrb.gmra.mxu0 %v2580_v16 }
 0x17a   : > { %v1068_v52 = vmin.f32 %v1066_v5, %v1067_v42  ;;  %v2981_v27 = vadd.f32 %v1297_v62, %v1239_v44  ;;  %1756 = vmatmul.f32.gmra.mxu2 %v2577_v15 }
 0x17c   : > { %v1069_v10 = vrot.slane %v1068_v52, 4  ;;  %1806 = vmatmul.f32.gmra.mxu3 %v2577_v15  ;;  %v1190_v33 = vpop.f32.mrf.mxu1 }
 0x17d   : > { %v1112_v48 = vpop.f32.mrf.mxu0  ;;  %v1243_v37 = vpop.f32.mrf.mxu2 }
 0x17e   : > { %v1070_v18 = vmin.f32 %v1068_v52, %v1069_v10  ;;  %v1191_v17 = vadd.f32 %v1190_v33, %v1112_v48  ;;  %v3334_v10 = vld [vmem:[#allocation10_spill] sm:$0xff] }
 0x17f   : > { %v1303_v1 = vpop.f32.mrf.mxu3  ;;  %1692 = vmatmul.f32.gmra.mxu1 %v2594_v25 }
 0x180   : > { %v1071_v9 = vrot.slane %v1070_v18, 2  ;;  %v1244_v3 = vadd.f32 %v1243_v37, %v1191_v17  ;;  %1632 = vmatmul.f32.gmra.mxu0 %v2583_v19 }
 0x182   : > { %v1072_v16 = vmin.f32 %v1070_v18, %v1071_v9  ;;  %v2987_v21 = vadd.f32 %v1303_v1, %v1244_v3  ;;  %1760 = vmatmul.f32.gmra.mxu2 %v2596_v26 }
 0x184   : > { %v1073_v15 = vrot.slane %v1072_v16, 1  ;;  %1810 = vmatmul.f32.gmra.mxu3 %v2596_v26  ;;  %v1194_v31 = vpop.f32.mrf.mxu1 }
 0x185   : > { %v1120_v5 = vpop.f32.mrf.mxu0  ;;  %v1248_v59 = vpop.f32.mrf.mxu2 }
 0x186   : > { %v1074_v41 = vmin.f32 %v1072_v16, %v1073_v15  ;;  %v1195_v54 = vadd.f32 %v1194_v31, %v1120_v5 }
 0x187   : > { %v1309_v45 = vpop.f32.mrf.mxu3  ;;  %1698 = vmatmul.f32.gmra.mxu1 %v2614_v35 }
 0x188   : > { %v1249_v23 = vadd.f32 %v1248_v59, %v1195_v54  ;;  %1637 = vmatmul.f32.gmra.mxu0 %v2606_v32  ;;  %v1077_v19 = vmin.f32 %v2214_v7, %v1074_v41  ;;  %v3333_v32 = vld [vmem:[#allocation9_spill] sm:$0xff] }
 0x18a   : > { %v2994_v25 = vadd.f32 %v1309_v45, %v1249_v23  ;;  %1764 = vmatmul.f32.gmra.mxu2 %v2616_v36  ;;  %2215 = vst.msk [vmem:[%s2563_s23 + $0x1] sm:$0x1] %vm2906_vm2, %v1077_v19 }
 0x18c   : > { %1814 = vmatmul.f32.gmra.mxu3 %v2616_v36  ;;  %v1198_v30 = vpop.f32.mrf.mxu1 }
 0x18d   : > { %v1128_v26 = vpop.f32.mrf.mxu0  ;;  %v1253_v58 = vpop.f32.mrf.mxu2 }
 0x18e   : > { %v1199_v20 = vadd.f32 %v1198_v30, %v1128_v26 }
 0x18f   : > { %v1315_v56 = vpop.f32.mrf.mxu3  ;;  %1704 = vmatmul.f32.gmra.mxu1 %v3333_v32 }
 0x190   : > { %v1254_v6 = vadd.f32 %v1253_v58, %v1199_v20  ;;  %1642 = vmatmul.f32.gmra.mxu0 %v2624_v39 }
 0x192   : > { %v3003_v35 = vadd.f32 %v1315_v56, %v1254_v6  ;;  %1768 = vmatmul.f32.gmra.mxu2 %v2634_v43 }
 0x194   : > { %1818 = vmatmul.f32.gmra.mxu3 %v2634_v43  ;;  %v1202_v38 = vpop.f32.mrf.mxu1 }
 0x195   : > { %v1136_v24 = vpop.f32.mrf.mxu0  ;;  %v1258_v36 = vpop.f32.mrf.mxu2 }
 0x196   : > { %v1203_v47 = vadd.f32 %v1202_v38, %v1136_v24 }
 0x197   : > { %v1321_v8 = vpop.f32.mrf.mxu3  ;;  %1710 = vmatmul.f32.gmra.mxu1 %v2650_v49 }
 0x198   : > { %v1259_v34 = vadd.f32 %v1258_v36, %v1203_v47  ;;  %1647 = vmatmul.f32.gmra.mxu0 %v2642_v46 }
 0x19a   : > { %v1322_v13 = vadd.f32 %v1321_v8, %v1259_v34  ;;  %1772 = vmatmul.f32.gmra.mxu2 %v2652_v50 }
 0x19c   : > { %1822 = vmatmul.f32.gmra.mxu3 %v2652_v50  ;;  %v1206_v62 = vpop.f32.mrf.mxu1 }
 0x19d   : > { %v1144_v39 = vpop.f32.mrf.mxu0  ;;  %v1263_v44 = vpop.f32.mrf.mxu2 }
 0x19e   : > { %v1207_v42 = vadd.f32 %v1206_v62, %v1144_v39 }
 0x19f   : > { %v1327_v43 = vpop.f32.mrf.mxu3  ;;  %1716 = vmatmul.f32.gmra.mxu1 %v3334_v10 }
 0x1a0   : > { %v1264_v52 = vadd.f32 %v1263_v44, %v1207_v42  ;;  %1652 = vmatmul.f32.gmra.mxu0 %v2660_v53 }
 0x1a2   : > { %v1328_v48 = vadd.f32 %v1327_v43, %v1264_v52  ;;  %1776 = vmatmul.f32.gmra.mxu2 %v2670_v57 }
 0x1a4   : > { %1826 = vmatmul.f32.gmra.mxu3 %v2670_v57  ;;  %v1210_v49 = vpop.f32.mrf.mxu1 }
 0x1a5   : > { %v1152_v46 = vpop.f32.mrf.mxu0  ;;  %v1268_v18 = vpop.f32.mrf.mxu2 }
 0x1a6   : > { %v1211_v33 = vadd.f32 %v1210_v49, %v1152_v46 }
 0x1a7   : > { %v1333_v50 = vpop.f32.mrf.mxu3  ;;  %1722 = vmatmul.f32.gmra.mxu1 %v2686_v63 }
 0x1a8   : > { %v1269_v17 = vadd.f32 %v1268_v18, %v1211_v33  ;;  %1657 = vmatmul.f32.gmra.mxu0 %v2678_v60 }
 0x1aa   : > { %v1334_v37 = vadd.f32 %v1333_v50, %v1269_v17  ;;  %1780 = vmatmul.f32.gmra.mxu2 %v2688_v0 }
 0x1ac   : > { %1830 = vmatmul.f32.gmra.mxu3 %v2688_v0  ;;  %v1214_v1 = vpop.f32.mrf.mxu1 }
 0x1ad   : > { %v1160_v53 = vpop.f32.mrf.mxu0  ;;  %v1273_v9 = vpop.f32.mrf.mxu2 }
 0x1ae   : > { %v1215_v33 = vadd.f32 %v1214_v1, %v1160_v53 }
 0x1af   : > { %v1339_v3 = vpop.f32.mrf.mxu3  ;;  %1728 = vmatmul.f32.gmra.mxu1 %v2702_v4 }
 0x1b0   : > { %1662 = vmatmul.f32.gmra.mxu0 %v2695_v2 }
 0x1b4   : > { %v1413_v16 = vpop.f32.mrf.mxu1 }
 0x1b5   : > { %v1363_v57 = vpop.f32.mrf.mxu0  ;;  %v1494_v60 = vpop.f32.mrf.mxu2 }
 0x1b6   : > { %v1364_v15 = vadd.f32 %v1363_v57, %v2981_v27 }
 0x1b7   : > { %v1576_v5 = vpop.f32.mrf.mxu3 }
 0x1b8   : > { %v3022_v63 = vadd.f32 %v1413_v16, %v1364_v15  ;;  %v1274_v15 = vadd.f32 %v1273_v9, %v1215_v33 }
 0x1ba   : > { %v1444_v31 = vmin.f32 %v2898_v22, %v3022_v63 }
 0x1bc   : > { %v1417_v7 = vpop.f32.mrf.mxu1 }
 0x1bd   : > { %v1367_v0 = vpop.f32.mrf.mxu0  ;;  %v3027_v54 = vpop.f32.mrf.mxu2 }
 0x1be   : > { %v1368_v41 = vadd.f32 %v1367_v0, %v2987_v21 }
 0x1bf   : > { %v3029_v2 = vpop.f32.mrf.mxu3 }
 0x1c0   : > { %v3031_v4 = vadd.f32 %v1417_v7, %v1368_v41 }
 0x1c2   : > { %v1445_v27 = vmin.f32 %v2915_v29, %v3031_v4 }
 0x1c4   : > { %v1421_v45 = vpop.f32.mrf.mxu1 }
 0x1c5   : > { %v1371_v59 = vpop.f32.mrf.mxu0  ;;  %v3036_v19 = vpop.f32.mrf.mxu2 }
 0x1c6   : > { %v1372_v23 = vadd.f32 %v1371_v59, %v2994_v25  ;;  %v1340_v59 = vadd.f32 %v1339_v3, %v1274_v15 }
 0x1c7   : > { %v3038_v26 = vpop.f32.mrf.mxu3 }
 0x1c8   : > { %v3040_v30 = vadd.f32 %v1421_v45, %v1372_v23 }
 0x1ca   : > { %v1446_v21 = vmin.f32 %v2929_v51, %v3040_v30 }
 0x1cc   : > { %v1425_v58 = vpop.f32.mrf.mxu1 }
 0x1cd   : > { %v1375_v20 = vpop.f32.mrf.mxu0  ;;  %v3045_v6 = vpop.f32.mrf.mxu2 }
 0x1ce   : > { %v1376_v56 = vadd.f32 %v1375_v20, %v3003_v35 }
 0x1cf   : > { %v3047_v32 = vpop.f32.mrf.mxu3 }
 0x1d0   : > { %v3049_v24 = vadd.f32 %v1425_v58, %v1376_v56  ;;  %v1577_v56 = vadd.f32 %v1576_v5, %v1494_v60 }
 0x1d2   : > { %v1447_v25 = vmin.f32 %v2940_v61, %v3049_v24 }
 0x1d4   : > { %v1429_v47 = vpop.f32.mrf.mxu1 }
 0x1d5   : > { %v1379_v38 = vpop.f32.mrf.mxu0  ;;  %v3053_v8 = vpop.f32.mrf.mxu2 }
 0x1d6   : > { %v1380_v36 = vadd.f32 %v1379_v38, %v1322_v13 }
 0x1d7   : > { %v3055_v34 = vpop.f32.mrf.mxu3 }
 0x1d8   : > { %v3057_v39 = vadd.f32 %v1429_v47, %v1380_v36 }
 0x1da   : > { %v1452_v35 = vmin.f32 %v3022_v63, %v3057_v39  ;;  %v1448_v62 = vmin.f32 %v2948_v28, %v3057_v39 }
 0x1dc   : > { %v1433_v44 = vpop.f32.mrf.mxu1 }
 0x1dd   : > { %v1383_v42 = vpop.f32.mrf.mxu0  ;;  %v3063_v52 = vpop.f32.mrf.mxu2 }
 0x1de   : > { %v1384_v43 = vadd.f32 %v1383_v42, %v1328_v48 }
 0x1df   : > { %v3065_v10 = vpop.f32.mrf.mxu3 }
 0x1e0   : > { %v3067_v13 = vadd.f32 %v1433_v44, %v1384_v43 }
 0x1e2   : > { %v1449_v46 = vmin.f32 %v2957_v11, %v3067_v13  ;;  %v1453_v49 = vmin.f32 %v3031_v4, %v3067_v13 }
 0x1e4   : > { %v1456_v18 = vmin.f32 %v1452_v35, %v1453_v49  ;;  %v1437_v17 = vpop.f32.mrf.mxu1 }
 0x1e5   : > { %v1387_v50 = vpop.f32.mrf.mxu0  ;;  %v3073_v16 = vpop.f32.mrf.mxu2 }
 0x1e6   : > { %v1388_v57 = vadd.f32 %v1387_v50, %v1334_v37 }
 0x1e7   : > { %v3075_v48 = vpop.f32.mrf.mxu3 }
 0x1e8   : > { %v3077_v0 = vadd.f32 %v1437_v17, %v1388_v57  ;;  %v1581_v17 = vadd.f32 %v3029_v2, %v3027_v54 }
 0x1ea   : > { %v1450_v7 = vmin.f32 %v2968_v55, %v3077_v0  ;;  %v1454_v41 = vmin.f32 %v3040_v30, %v3077_v0 }
 0x1ec   : > { %v1441_v53 = vpop.f32.mrf.mxu1 }
 0x1ed   : > { %v1391_v45 = vpop.f32.mrf.mxu0  ;;  %v3083_v23 = vpop.f32.mrf.mxu2 }
 0x1ee   : > { %v1392_v1 = vadd.f32 %v1391_v45, %v1340_v59 }
 0x1ef   : > { %v3085_v37 = vpop.f32.mrf.mxu3 }
 0x1f0   : > { %v3087_v20 = vadd.f32 %v1441_v53, %v1392_v1 }
 0x1f2   : > { %v1451_v9 = vmin.f32 %v2976_v12, %v3087_v20  ;;  %v1455_v58 = vmin.f32 %v3049_v24, %v3087_v20 }
 0x1f4   : > { %v1457_v38 = vmin.f32 %v1454_v41, %v1455_v58  ;;  %v1687_v36 = vpop.f32.mrf.mxu1 }
 0x1f5   : > { %v1628_v47 = vpop.f32.mrf.mxu0  ;;  %v1753_v42 = vpop.f32.mrf.mxu2 }
 0x1f6   : > { %v1458_v3 = vmin.f32 %v1456_v18, %v1457_v38  ;;  %v1629_v35 = vadd.f32 %v1628_v47, %v1577_v56  ;;  %v2217_v56 = vld [vmem:[%s2563_s23 + $0x2] sm:$0x1]  ;;  %v1585_v38 = vadd.f32 %v3038_v26, %v3036_v19  ;;  %v1589_v19 = vadd.f32 %v3047_v32, %v3045_v6 }
 0x1f7   : > { %v1803_v44 = vpop.f32.mrf.mxu3 }
 0x1f8   : > { %v1459_v43 = vrot.slane %v1458_v3, 4  ;;  %v1688_v49 = vadd.f32 %v1687_v36, %v1629_v35 }
 0x1fa   : > { %v1460_v33 = vmin.f32 %v1458_v3, %v1459_v43  ;;  %v1754_v50 = vadd.f32 %v1753_v42, %v1688_v49 }
 0x1fc   : > { %v1461_v57 = vrot.slane %v1460_v33, 2  ;;  %v3095_v15 = vadd.f32 %v1803_v44, %v1754_v50  ;;  %v1693_v60 = vpop.f32.mrf.mxu1 }
 0x1fd   : > { %v1633_v59 = vpop.f32.mrf.mxu0  ;;  %v1757_v45 = vpop.f32.mrf.mxu2 }
 0x1fe   : > { %v1462_v5 = vmin.f32 %v1460_v33, %v1461_v57  ;;  %v1634_v41 = vadd.f32 %v1633_v59, %v1581_v17  ;;  %v1834_v18 = vmin.f32 %v1444_v31, %v3095_v15  ;;  %v1593_v59 = vadd.f32 %v3055_v34, %v3053_v8 }
 0x1ff   : > { %v1807_v53 = vpop.f32.mrf.mxu3 }
 0x200   : > { %v1463_v1 = vrot.slane %v1462_v5, 1  ;;  %v1694_v58 = vadd.f32 %v1693_v60, %v1634_v41  ;;  %1859 = vmin.xlane.f32.xlu0 %v1834_v18 }
 0x202   : > { %v1464_v54 = vmin.f32 %v1462_v5, %v1463_v1  ;;  %v1758_v2 = vadd.f32 %v1757_v45, %v1694_v58 }
 0x204   : > { %v3104_v47 = vadd.f32 %v1807_v53, %v1758_v2  ;;  %v1467_v36 = vmin.f32 %v2217_v56, %v1464_v54  ;;  %v1699_v35 = vpop.f32.mrf.mxu1 }
 0x205   : > { %v1638_v3 = vpop.f32.mrf.mxu0  ;;  %v1761_v63 = vpop.f32.mrf.mxu2 }
 0x206   : > { %v1639_v42 = vadd.f32 %v1638_v3, %v1585_v38  ;;  %v1835_v22 = vmin.f32 %v1445_v27, %v3104_v47  ;;  %2218 = vst.msk [vmem:[%s2563_s23 + $0x2] sm:$0x1] %vm2906_vm2, %v1467_v36 }
 0x207   : > { %v1811_v31 = vpop.f32.mrf.mxu3 }
 0x208   : > { %v1700_v44 = vadd.f32 %v1699_v35, %v1639_v42  ;;  %1861 = vmin.xlane.f32.xlu0 %v1835_v22 }
 0x20a   : > { %v1762_v43 = vadd.f32 %v1761_v63, %v1700_v44 }
 0x20c   : > { %v1812_v26 = vadd.f32 %v1811_v31, %v1762_v43  ;;  %v1705_v33 = vpop.f32.mrf.mxu1 }
 0x20d   : > { %v1643_v49 = vpop.f32.mrf.mxu0  ;;  %v1765_v4 = vpop.f32.mrf.mxu2 }
 0x20e   : > { %v1644_v50 = vadd.f32 %v1643_v49, %v1589_v19  ;;  %v1836_v29 = vmin.f32 %v1446_v21, %v1812_v26  ;;  %v1597_v21 = vadd.f32 %v3065_v10, %v3063_v52 }
 0x20f   : > { %v1815_v27 = vpop.f32.mrf.mxu3 }
 0x210   : > { %v1706_v17 = vadd.f32 %v1705_v33, %v1644_v50  ;;  %1863 = vmin.xlane.f32.xlu1 %v1836_v29 }
 0x212   : > { %v1766_v57 = vadd.f32 %v1765_v4, %v1706_v17 }
 0x214   : > { %v1816_v60 = vadd.f32 %v1815_v27, %v1766_v57  ;;  %v1711_v41 = vpop.f32.mrf.mxu1 }
 0x215   : > { %v1648_v5 = vpop.f32.mrf.mxu0  ;;  %v1769_v18 = vpop.f32.mrf.mxu2 }
 0x216   : > { %v1649_v6 = vadd.f32 %v1648_v5, %v1593_v59  ;;  %v1837_v32 = vmin.f32 %v1447_v25, %v1816_v60  ;;  %v1601_v25 = vadd.f32 %v3075_v48, %v3073_v16 }
 0x217   : > { %v1819_v45 = vpop.f32.mrf.mxu3 }
 0x218   : > { %v1712_v51 = vadd.f32 %v1711_v41, %v1649_v6  ;;  %1865 = vmin.xlane.f32.xlu1 %v1837_v32 }
 0x21a   : > { %v1770_v30 = vadd.f32 %v1769_v18, %v1712_v51 }
 0x21c   : > { %v1820_v53 = vadd.f32 %v1819_v45, %v1770_v30  ;;  %v1717_v58 = vpop.f32.mrf.mxu1 }
 0x21d   : > { %v1653_v1 = vpop.f32.mrf.mxu0  ;;  %v1773_v56 = vpop.f32.mrf.mxu2 }
 0x21e   : > { %v1654_v8 = vadd.f32 %v1653_v1, %v1597_v21  ;;  %v1838_v34 = vmin.f32 %v1448_v62, %v1820_v53  ;;  %v1605_v62 = vadd.f32 %v3085_v37, %v3083_v23  ;;  %v1842_v19 = vmin.f32 %v3095_v15, %v1820_v53 }
 0x21f   : > { %v1823_v54 = vpop.f32.mrf.mxu3 }
 0x220   : > { %v1718_v61 = vadd.f32 %v1717_v58, %v1654_v8  ;;  %1867 = vmin.xlane.f32.xlu2 %v1838_v34 }
 0x222   : > { %v1774_v24 = vadd.f32 %v1773_v56, %v1718_v61 }
 0x224   : > { %v1824_v2 = vadd.f32 %v1823_v54, %v1774_v24  ;;  %v1723_v36 = vpop.f32.mrf.mxu1 }
 0x225   : > { %v1658_v38 = vpop.f32.mrf.mxu0  ;;  %v1777_v3 = vpop.f32.mrf.mxu2 }
 0x226   : > { %v1659_v52 = vadd.f32 %v1658_v38, %v1601_v25  ;;  %v1839_v10 = vmin.f32 %v1449_v46, %v1824_v2  ;;  %v1843_v46 = vmin.f32 %v3104_v47, %v1824_v2  ;;  %v2220_v47 = vld [vmem:[%s2563_s23 + $0x3] sm:$0x1]  ;;  %v3170_v38 = vshrl.u32 %v684_v40, 7 }
 0x227   : > { %v1827_v35 = vpop.f32.mrf.mxu3 }
 0x228   : > { %v1724_v28 = vadd.f32 %v1723_v36, %v1659_v52  ;;  %1869 = vmin.xlane.f32.xlu2 %v1839_v10  ;;  %v1846_v55 = vmin.f32 %v1842_v19, %v1843_v46 }
 0x22a   : > { %v1778_v39 = vadd.f32 %v1777_v3, %v1724_v28  ;;  %v3173_v3 = vstv %s2222_s30 }
 0x22c   : > { %v1828_v42 = vadd.f32 %v1827_v35, %v1778_v39  ;;  %v1729_v63 = vpop.f32.mrf.mxu1 }
 0x22d   : > { %v1663_v22 = vpop.f32.mrf.mxu0  ;;  %v1781_v31 = vpop.f32.mrf.mxu2 }
 0x22e   : > { %v1664_v16 = vadd.f32 %v1663_v22, %v1605_v62  ;;  %v1840_v48 = vmin.f32 %v1450_v7, %v1828_v42  ;;  %v1844_v23 = vmin.f32 %v1812_v26, %v1828_v42  ;;  %v1984_v62 = vadd.s32 8, %v3170_v38 }
 0x22f   : > { %v1831_v11 = vpop.f32.mrf.mxu3  ;;  %v1992_v42 = vadd.s32 %v3173_v3, %v3170_v38 }
 0x230   : > { %v1730_v44 = vadd.f32 %v1729_v63, %v1664_v16  ;;  %1871 = vmin.xlane.f32.xlu0 %v1840_v48  ;;  %v1985_v16 = vadd.s32 16, %v3170_v38  ;;  %v1993_v46 = vadd.s32 %v3173_v3, %v1984_v62 }
 0x231   : > { %vm2000_vm3 = vcmp.lt.s32.totalorder %v1992_v42, 200 }
 0x232   : > { %v1782_v13 = vadd.f32 %v1781_v31, %v1730_v44  ;;  %vm2001_vm9 = vcmp.lt.s32.totalorder %v1993_v46, 200 }
 0x234   : > { %v1832_v43 = vadd.f32 %v1831_v11, %v1782_v13 }
 0x236   : > { %v1845_v37 = vmin.f32 %v1816_v60, %v1832_v43  ;;  %v1841_v49 = vmin.f32 %v1451_v9, %v1832_v43 }
 0x238   : > { %v1847_v0 = vmin.f32 %v1844_v23, %v1845_v37  ;;  %1873 = vmin.xlane.f32.xlu1 %v1841_v49  ;;  %v1986_v49 = vadd.s32 24, %v3170_v38 }
 0x23a   : > { %v1848_v7 = vmin.f32 %v1846_v55, %v1847_v0  ;;  %v1994_v55 = vadd.s32 %v3173_v3, %v1985_v16 }
 0x23c   : > { %v1849_v33 = vrot.slane %v1848_v7, 4  ;;  %vm2002_vm10 = vcmp.lt.s32.totalorder %v1994_v55, 200 }
 0x23e   : > { %v1850_v50 = vmin.f32 %v1848_v7, %v1849_v33 }
 0x240   : > { %v1851_v29 = vrot.slane %v1850_v50, 2 }
 0x242   : > { %v1852_v4 = vmin.f32 %v1850_v50, %v1851_v29 }
 0x244   : > { %v1853_v27 = vrot.slane %v1852_v4, 1 }
 0x246   : > { %v1854_v17 = vmin.f32 %v1852_v4, %v1853_v27  ;;  %v1987_v4 = vadd.s32 32, %v3170_v38 }
 0x248   : > { %v1857_v57 = vmin.f32 %v2220_v47, %v1854_v17 }
 0x24a   : > { %2221 = vst.msk [vmem:[%s2563_s23 + $0x3] sm:$0x1] %vm2906_vm2, %v1857_v57 }
 0x273   : > { %v1860_v15 = vpop.xlane.xlu0 %1859 }
 0x274   : > { %v3147_v59 = vmax.f32 %v1860_v15, 0.0  ;;  %v1995_v15 = vadd.s32 %v3173_v3, %v1986_v49 }
 0x276   : > { %2308 = vrsqrt.f32 %v3147_v59  ;;  %vm1890_vm4 = vcmp.eq.f32.partialorder %v3147_v59, inf  ;;  %v1893_v0 = vand.u32 2147483648, %v3147_v59  ;;  %vm1892_vm7 = vcmp.eq.f32.partialorder %v3147_v59, 0.0 }
 0x277   : > { %vm2003_vm12 = vcmp.lt.s32.totalorder %v1995_v15, 200 }
 0x27b   : > { %v1862_v26 = vpop.xlane.xlu0 %1861 }
 0x27c   : > { %v3149_v12 = vmax.f32 %v1862_v26, 0.0  ;;  %v2309_v60 = vpop.eup %2308 }
 0x27d   : > { %v1884_v6 = vmul.f32 %v2309_v60, %v3147_v59 }
 0x27e   : > { %2310 = vrsqrt.f32 %v3149_v12  ;;  %vm1902_vm6 = vcmp.eq.f32.partialorder %v3149_v12, inf  ;;  %v1905_v29 = vand.u32 2147483648, %v3149_v12  ;;  %vm1904_vm8 = vcmp.eq.f32.partialorder %v3149_v12, 0.0 }
 0x27f   : > { %v1885_v45 = vmul.f32 %v2309_v60, %v1884_v6 }
 0x281   : > { %v1886_v58 = vmul.f32 0.5, %v1885_v45 }
 0x283   : > { %v1864_v20 = vpop.xlane.xlu1 %1863  ;;  %v1887_v54 = vsub.f32 1.5, %v1886_v58 }
 0x284   : > { %v3153_v9 = vmax.f32 %v1864_v20, 0.0  ;;  %v2311_v14 = vpop.eup %2310 }
 0x285   : > { %v1896_v32 = vmul.f32 %v2311_v14, %v3149_v12  ;;  %v1888_v35 = vmul.f32 %v2309_v60, %v1887_v54 }
 0x286   : > { %2312 = vrsqrt.f32 %v3153_v9  ;;  %vm1914_vm11 = vcmp.eq.f32.partialorder %v3153_v9, inf  ;;  %vm1916_vm13 = vcmp.eq.f32.partialorder %v3153_v9, 0.0 }
 0x287   : > { %v1897_v30 = vmul.f32 %v2311_v14, %v1896_v32  ;;  %v1889_v40 = vmul.f32 %v1888_v35, %v3147_v59  ;;  %v1996_v32 = vadd.s32 %v3173_v3, %v1987_v4 }
 0x289   : > { %v1898_v8 = vmul.f32 0.5, %v1897_v30  ;;  %v1891_v37 = vsel %vm1890_vm4, %v3147_v59, %v1889_v40  ;;  %vm2004_vm15 = vcmp.lt.s32.totalorder %v1996_v32, 200 }
 0x28a   : > { %v1894_v27 = vsel %vm1892_vm7, %v1893_v0, %v1891_v37 }
 0x28b   : > { %v1866_v5 = vpop.xlane.xlu1 %1865  ;;  %v1899_v2 = vsub.f32 1.5, %v1898_v8 }
 0x28c   : > { %v3156_v41 = vmax.f32 %v1866_v5, 0.0  ;;  %v2313_v18 = vpop.eup %2312  ;;  %v1988_v5 = vadd.s32 40, %v3170_v38 }
 0x28d   : > { %v1908_v53 = vmul.f32 %v2313_v18, %v3153_v9  ;;  %v1900_v39 = vmul.f32 %v2311_v14, %v1899_v2 }
 0x28e   : > { %2314 = vrsqrt.f32 %v3156_v41  ;;  %vm1926_vm14 = vcmp.eq.f32.partialorder %v3156_v41, inf  ;;  %vm1928_vm0 = vcmp.eq.f32.partialorder %v3156_v41, 0.0 }
 0x28f   : > { %v1909_v56 = vmul.f32 %v2313_v18, %v1908_v53  ;;  %v1901_v13 = vmul.f32 %v1900_v39, %v3149_v12  ;;  %v1917_v53 = vand.u32 2147483648, %v3153_v9 }
 0x291   : > { %v1910_v36 = vmul.f32 0.5, %v1909_v56  ;;  %v1903_v50 = vsel %vm1902_vm6, %v3149_v12, %v1901_v13 }
 0x292   : > { %v1906_v20 = vsel %vm1904_vm8, %v1905_v29, %v1903_v50 }
 0x293   : > { %v1868_v51 = vpop.xlane.xlu2 %1867  ;;  %v1911_v22 = vsub.f32 1.5, %v1910_v36 }
 0x294   : > { %v3161_v21 = vmax.f32 %v1868_v51, 0.0  ;;  %v2315_v1 = vpop.eup %2314 }
 0x295   : > { %v1920_v34 = vmul.f32 %v2315_v1, %v3156_v41  ;;  %v1912_v43 = vmul.f32 %v2313_v18, %v1911_v22  ;;  %v2008_v18 = vsel %vm2000_vm3, %v1894_v27, 0.0 }
 0x296   : > { %2316 = vrsqrt.f32 %v3161_v21  ;;  %v2018_v54 = vsel %vm2017_vm5, %v2008_v18, 0.0  ;;  %vm1938_vm1 = vcmp.eq.f32.partialorder %v3161_v21, inf  ;;  %v1941_v42 = vand.u32 2147483648, %v3161_v21 }
 0x297   : > { %v1921_v52 = vmul.f32 %v2315_v1, %v1920_v34  ;;  %v1913_v47 = vmul.f32 %v1912_v43, %v3153_v9  ;;  %v1997_v34 = vadd.s32 %v3173_v3, %v1988_v5  ;;  %vm1940_vm4 = vcmp.eq.f32.partialorder %v3161_v21, 0.0 }
 0x299   : > { %v1922_v63 = vmul.f32 0.5, %v1921_v52  ;;  %v1915_v12 = vsel %vm1914_vm11, %v3153_v9, %v1913_v47  ;;  %v1929_v9 = vand.u32 2147483648, %v3156_v41  ;;  %v1989_v52 = vadd.s32 48, %v3170_v38 }
 0x29a   : > { %v1918_v56 = vsel %vm1916_vm13, %v1917_v53, %v1915_v12  ;;  %vm2005_vm2 = vcmp.lt.s32.totalorder %v1997_v34, 200 }
 0x29b   : > { %v1870_v61 = vpop.xlane.xlu2 %1869  ;;  %v1923_v19 = vsub.f32 1.5, %v1922_v63 }
 0x29c   : > { %v2317_v24 = vpop.eup %2316  ;;  %v3167_v25 = vmax.f32 %v1870_v61, 0.0 }
 0x29d   : > { %v1932_v10 = vmul.f32 %v2317_v24, %v3161_v21  ;;  %v1924_v17 = vmul.f32 %v2315_v1, %v1923_v19  ;;  %v2009_v1 = vsel %vm2001_vm9, %v1906_v20, 0.0 }
 0x29e   : > { %2318 = vrsqrt.f32 %v3167_v25  ;;  %v2019_v36 = vsel %vm2017_vm5, %v2009_v1, 0.0  ;;  %vm1950_vm3 = vcmp.eq.f32.partialorder %v3167_v25, inf  ;;  %vm1952_vm6 = vcmp.eq.f32.partialorder %v3167_v25, 0.0 }
 0x29f   : > { %v1933_v28 = vmul.f32 %v2317_v24, %v1932_v10  ;;  %v1925_v45 = vmul.f32 %v1924_v17, %v3156_v41  ;;  %v2020_v22 = vadd.f32 %v2019_v36, %v2018_v54 }
 0x2a1   : > { %v1934_v31 = vmul.f32 0.5, %v1933_v28  ;;  %v1927_v61 = vsel %vm1926_vm14, %v3156_v41, %v1925_v45  ;;  %v2010_v28 = vsel %vm2002_vm10, %v1918_v56, 0.0 }
 0x2a2   : > { %v1930_v62 = vsel %vm1928_vm0, %v1929_v9, %v1927_v61 }
 0x2a3   : > { %v1872_v48 = vpop.xlane.xlu0 %1871  ;;  %v1935_v7 = vsub.f32 1.5, %v1934_v31  ;;  %v1998_v31 = vadd.s32 %v3173_v3, %v1989_v52  ;;  %v2011_v43 = vsel %vm2003_vm12, %v1930_v62, 0.0 }
 0x2a4   : > { %v2319_v44 = vpop.eup %2318  ;;  %v3181_v11 = vmax.f32 %v1872_v48, 0.0  ;;  %v1953_v48 = vand.u32 2147483648, %v3167_v25  ;;  %v2023_v0 = vsel %vm2017_vm5, %v2011_v43, 0.0 }
 0x2a5   : > { %v1944_v23 = vmul.f32 %v2319_v44, %v3167_v25  ;;  %v1936_v59 = vmul.f32 %v2317_v24, %v1935_v7  ;;  %vm2006_vm9 = vcmp.lt.s32.totalorder %v1998_v31, 200 }
 0x2a6   : > { %2320 = vrsqrt.f32 %v3181_v11  ;;  %vm1962_vm7 = vcmp.eq.f32.partialorder %v3181_v11, inf  ;;  %v1965_v19 = vand.u32 2147483648, %v3181_v11  ;;  %vm1964_vm8 = vcmp.eq.f32.partialorder %v3181_v11, 0.0 }
 0x2a7   : > { %v1945_v33 = vmul.f32 %v2319_v44, %v1944_v23  ;;  %v1937_v58 = vmul.f32 %v1936_v59, %v3161_v21  ;;  %v1990_v23 = vadd.s32 56, %v3170_v38 }
 0x2a9   : > { %v1946_v57 = vmul.f32 0.5, %v1945_v33  ;;  %v1939_v10 = vsel %vm1938_vm1, %v3161_v21, %v1937_v58  ;;  %v1999_v29 = vadd.s32 %v3173_v3, %v1990_v23 }
 0x2aa   : > { %v1942_v16 = vsel %vm1940_vm4, %v1941_v42, %v1939_v10 }
 0x2ab   : > { %v1874_v26 = vpop.xlane.xlu1 %1873  ;;  %v1947_v60 = vsub.f32 1.5, %v1946_v57  ;;  %v2012_v55 = vsel %vm2004_vm15, %v1942_v16, 0.0  ;;  %vm2007_vm11 = vcmp.lt.s32.totalorder %v1999_v29, 200 }
 0x2ac   : > { %v2321_v14 = vpop.eup %2320  ;;  %v3201_v6 = vmax.f32 %v1874_v26, 0.0  ;;  %v2025_v4 = vsel %vm2017_vm5, %v2012_v55, 0.0 }
 0x2ad   : > { %v1948_v51 = vmul.f32 %v2319_v44, %v1947_v60  ;;  %v1956_v30 = vmul.f32 %v2321_v14, %v3181_v11  ;;  %v2021_v44 = vsel %vm2017_vm5, %v2010_v28, 0.0 }
 0x2ae   : > { %2322 = vrsqrt.f32 %v3201_v6  ;;  %v2022_v50 = vadd.f32 %v2021_v44, %v2020_v22  ;;  %vm1974_vm10 = vcmp.eq.f32.partialorder %v3201_v6, inf  ;;  %v1977_v15 = vand.u32 2147483648, %v3201_v6 }
 0x2af   : > { %v1957_v8 = vmul.f32 %v2321_v14, %v1956_v30  ;;  %v1949_v24 = vmul.f32 %v1948_v51, %v3167_v25  ;;  %vm1976_vm12 = vcmp.eq.f32.partialorder %v3201_v6, 0.0 }
 0x2b0   : > { %v2024_v47 = vadd.f32 %v2023_v0, %v2022_v50 }
 0x2b1   : > { %v1958_v2 = vmul.f32 0.5, %v1957_v8  ;;  %v1951_v41 = vsel %vm1950_vm3, %v3167_v25, %v1949_v24 }
 0x2b2   : > { %v1954_v21 = vsel %vm1952_vm6, %v1953_v48, %v1951_v41  ;;  %v2026_v57 = vadd.f32 %v2025_v4, %v2024_v47 }
 0x2b3   : > { %v1959_v35 = vsub.f32 1.5, %v1958_v2  ;;  %v2013_v33 = vsel %vm2005_vm2, %v1954_v21, 0.0 }
 0x2b4   : > { %v2323_v39 = vpop.eup %2322 }
 0x2b5   : > { %v1960_v63 = vmul.f32 %v2321_v14, %v1959_v35  ;;  %v1968_v40 = vmul.f32 %v2323_v39, %v3201_v6 }
 0x2b7   : > { %v1961_v13 = vmul.f32 %v1960_v63, %v3181_v11  ;;  %v1969_v46 = vmul.f32 %v2323_v39, %v1968_v40 }
 0x2b9   : > { %v1963_v37 = vsel %vm1962_vm7, %v3181_v11, %v1961_v13  ;;  %v1970_v49 = vmul.f32 0.5, %v1969_v46  ;;  %v2027_v11 = vsel %vm2017_vm5, %v2013_v33, 0.0 }
 0x2ba   : > { %v1966_v25 = vsel %vm1964_vm8, %v1965_v19, %v1963_v37  ;;  %v2028_v20 = vadd.f32 %v2027_v11, %v2026_v57 }
 0x2bb   : > { %v1971_v7 = vsub.f32 1.5, %v1970_v49  ;;  %v2014_v27 = vsel %vm2006_vm9, %v1966_v25, 0.0 }
 0x2bc   : > { %v2029_v26 = vsel %vm2017_vm5, %v2014_v27, 0.0 }
 0x2bd   : > { %v1972_v38 = vmul.f32 %v2323_v39, %v1971_v7  ;;  %v2030_v5 = vadd.f32 %v2029_v26, %v2028_v20 }
 0x2bf   : > { %v1973_v17 = vmul.f32 %v1972_v38, %v3201_v6 }
 0x2c1   : > { %v1975_v3 = vsel %vm1974_vm10, %v3201_v6, %v1973_v17 }
 0x2c2   : > { %v1978_v59 = vsel %vm1976_vm12, %v1977_v15, %v1975_v3 }
 0x2c3   : > { %v2015_v60 = vsel %vm2007_vm11, %v1978_v59, 0.0 }
 0x2c4   : > { %v2031_v14 = vsel %vm2017_vm5, %v2015_v60, 0.0 }
 0x2c5   : > { %v2032_v32 = vadd.f32 %v2031_v14, %v2030_v5 }
 0x2c7   : > { %2033 = vadd.xlane.f32.xlu2 %v2032_v32 }
 0x2c8   : > { %2351 = shalt.err (!%p2348_p8)
}
 0x2c9   : > { %2231 = dma.vmem_to_hbm [thread:$0]  (%p2523_p3), %s2078_s7, 64, %s2080_s8, %s2050_s9   ;;  %v2016_v1 = vld [vmem:[%s2561_s27] sm:$0x1] }
 0x2ca   : > { %s2060_s15 = scalar_lea.hbm %s3319_s2, %s2438_s16  ;;  %s2062_s4 = sshll.u32 %s2561_s27, 4  ;;  %s2063_s4 = int_to_ptr.vmem [resolvable:$true] %s2062_s4 }
 0x2cb   : > { %s2064_s5 = sshll.u32 %s2060_s15, 4  ;;  %s2046_s7 = scalar_lea.sflag [#allocation3], %s2544_s29  ;;  %s2065_s5 = int_to_ptr.hbm [resolvable:$true] %s2064_s5 }
 0x2cc   : > { %s2366_s8 = sshra.s32 %s2065_s5, 4  ;;  %s2372_s16 = scalar_lea.hbm %s3319_s2, 2  ;;  %s2367_s8 = int_to_ptr.hbm [resolvable:$true] %s2366_s8 }
 0x2cd   : > { %s2368_s9 = scalar_lea.hbm %s2367_s8, 1  ;;  %p2373_p13 = scmp.lt.s32.totalorder %s2367_s8, %s3319_s2 }
 0x2ce   : > { %p2369_p10 = scmp.ne.s32.totalorder %s2367_s8, %s2368_s9  ;;  %p2374_p0 = scmp.lt.s32.totalorder %s2372_s16, %s2368_s9 }
 0x2d0   : > { %p2370_p11 = pnand %p2369_p10, %p2523_p3  ;;  %p2375_p1 = por %p2374_p0, %p2373_p13 }
 0x2d2   : > { %p2371_p12 = pneg %p2370_p11 }
 0x2d4   : > { %p2376_p2 = pnand %p2375_p1, %p2371_p12 }
 0x33a   : > { %v2034_v6 = vpop.xlane.xlu2 %2033 }
 0x33b   : > { %v2035_v18 = vrot.slane %v2034_v6, 4 }
 0x33d   : > { %v2036_v12 = vadd.f32 %v2035_v18, %v2034_v6 }
 0x33f   : > { %v2037_v45 = vrot.slane %v2036_v12, 2 }
 0x341   : > { %v2038_v51 = vadd.f32 %v2037_v45, %v2036_v12 }
 0x343   : > { %v2039_v30 = vrot.slane %v2038_v51, 1 }
 0x345   : > { %v2040_v53 = vadd.f32 %v2039_v30, %v2038_v51 }
 0x347   : > { %2228 = vpush %v2040_v53 }
 0x378   : > { %s2229_s6 = spop %2228 }
 0x379   : > { %v2042_v58 = vstv %s2229_s6 }
 0x37a   : > { %v2043_v8 = vadd.f32 %v2042_v58, %v2016_v1 }
 0x37c   : > { %2044 = vst [vmem:[%s2561_s27] sm:$0x1] %v2043_v8 }
 0x37d   : > { %2379 = shalt.err (!%p2376_p2)
}
 0x37e   : > { %2230 = dma.vmem_to_hbm [thread:$0]  (%p2523_p3), %s2063_s4, 16, %s2065_s5, %s2046_s7  }
 0x37f PF: > { %p2241_p4 = scmp.ge.s32.totalorder %s2450_s19, 2  ;;  %s2091_s29 = sand.u32 1, %s2422_s12  }
 0x380   : > { %s2092_s27 = scalar_lea.sflag [#allocation3], %s2091_s29 }
 0x381   : > { %p2235_p5 = pnand %p2241_p4, %p2533_p9 }
 0x383   : > { %p2236_p6 = pneg %p2235_p5 }
 0x385   : > { %2413 = dma.done.wait (%p2236_p6), %s2092_s27, 16  }
 0x386   : > { %2415 = vsyncadd (%p2236_p6), %s2092_s27, 4294967280  ;;  %s2101_s26 = scalar_lea.sflag [#allocation5], %s2091_s29 }
 0x387   : > { %2417 = dma.done.wait (%p2236_p6), %s2101_s26, 64  }
 0x388   : > { %2419 = vsyncadd (%p2236_p6), %s2101_s26, 4294967232  ;;  %s20_s19 = sadd.s32 1, %s2450_s19   ;;  %s3335_s24 = sld [smem:[#allocation8_spill]] }
 0x389   : > { %p17_p7 = scmp.ge.s32.totalorder %s20_s19, 10   ;;  %s3336_s12 = smov %s2426_s13 }
 0x38a   : > { %s3337_s13 = smov %s2430_s14  ;;  %s3338_s14 = smov %s2541_s28 }
 0x38b   : > { %s3339_s15 = smov %s2442_s17  ;;  %s3340_s16 = smov %s2446_s18 }
 0x38c   : > { %s3341_s17 = smov %s3344_s22  ;;  %19 = sbr.rel (!%p17_p7) target bundleno = 9 (0x9), region = 93 }
 0x38e   : > { %s3342_s18 = smov %s3335_s24 }
 0x391   :  { %2107 = vsyncpa [#allocation3], 1 }
 0x392   :  { %2109 = vsyncpa [#allocation3 + $0x1], 1 }
 0x393   :  { %2110 = vsyncpa [#allocation5], 1 }
 0x394   :  { %2112 = vsyncpa [#allocation5 + $0x1], 1 }

</bundles_post_ra>
